<compile_context>
chip_gen: v7x
topology: tpu7x:2x2x1
jax: 0.10.0
libtpu: 0.0.40
codegen_flags: <defaults>
</compile_context>

<pallas_src>
import functools

import jax
import jax.numpy as jnp
from jax.experimental import pallas as pl
from jax.experimental.pallas import tpu as pltpu


def _round_up(x, m):
    return ((x + m - 1) // m) * m


def _pick_vmem_limit():
    # Size the scoped-VMEM budget off the actual part (128 MiB v5e/v6e,
    # 64 MiB per-TC on v7x) instead of the blanket 32 MiB default.
    cap = 64 * 1024 * 1024
    try:
        cap = int(pltpu.get_tpu_info().vmem_capacity_bytes)
    except Exception:
        pass
    return max(32 * 1024 * 1024, int(cap * 0.8))


def _attention_kernel(x_ref, wq_ref, wk_ref, wv_ref, wp_ref, bp_ref, o_ref,
                      k_scr, v_scr, *, num_heads, seq_len, q_tile):
    # x_ref:  (1, N_pad, C) bf16  full (padded) sequence, resident across q-tiles
    # w*_ref: (C, C)        bf16  projection weights (scale folded into wq)
    # bp_ref: (1, C)        f32   output projection bias
    # o_ref:  (1, TQ, C)
    # k_scr/v_scr: (H, N_pad, D) bf16 persistent scratch (filled at qi == 0)
    H = num_heads
    n_pad = x_ref.shape[1]
    C = x_ref.shape[2]
    D = C // H
    TQ = q_tile
    qi = pl.program_id(1)

    # ---- K/V projection: hoisted out of the q-tile loop (once per batch b) ----
    @pl.when(qi == 0)
    def _project_kv():
        xkv = x_ref[0]                                                  # (N_pad, C)
        k = jnp.dot(xkv, wk_ref[...], preferred_element_type=jnp.float32)
        v = jnp.dot(xkv, wv_ref[...], preferred_element_type=jnp.float32)
        k_bf = k.astype(jnp.bfloat16)
        v_bf = v.astype(jnp.bfloat16)
        for h in range(H):                       # static unroll: head-major scratch
            k_scr[h] = k_bf[:, h * D:(h + 1) * D]
            v_scr[h] = v_bf[:, h * D:(h + 1) * D]

    # ---- Q projection for this tile (1/sqrt(D) already folded into wq) ----
    q_start = pl.multiple_of(qi * TQ, TQ)
    xq = x_ref[0, pl.ds(q_start, TQ), :]                                # (TQ, C) bf16
    q = jnp.dot(xq, wq_ref[...], preferred_element_type=jnp.float32)
    q_bf = q.astype(jnp.bfloat16)
    qh = jnp.stack([q_bf[:, h * D:(h + 1) * D] for h in range(H)], axis=0)  # (H,TQ,D)

    # ---- scores + (masked) numerically stable softmax over keys ----
    scores = jnp.einsum("htd,hnd->htn", qh, k_scr[...],
                        preferred_element_type=jnp.float32)             # (H, TQ, N_pad)
    if n_pad > seq_len:  # static: only when the sequence was padded
        key_idx = jax.lax.broadcasted_iota(jnp.int32, (1, 1, n_pad), 2)
        scores = jnp.where(key_idx < seq_len, scores, -1e30)
    m = jnp.max(scores, axis=-1, keepdims=True)
    p = jnp.exp(scores - m)
    denom = jnp.sum(p, axis=-1, keepdims=True)
    p = p * pl.reciprocal(denom, approx=True)        # EUP reciprocal, not a VALU divide

    # ---- PV (bf16 probabilities, f32 accumulation) and head merge ----
    ctx = jnp.einsum("htn,hnd->htd", p.astype(jnp.bfloat16), v_scr[...],
                     preferred_element_type=jnp.float32)                # (H, TQ, D)
    ctx_bf = ctx.astype(jnp.bfloat16)
    merged = jnp.concatenate([ctx_bf[h] for h in range(H)], axis=1)     # (TQ, C)

    # ---- output projection + bias (proj_drop is identity) ----
    out = jnp.dot(merged, wp_ref[...], preferred_element_type=jnp.float32) + bp_ref[...]
    o_ref[0] = out.astype(o_ref.dtype)


def attention_pallas(x, w_qkv, w_proj, b_proj, *, num_heads, q_tile=256):
    """x: (B, N, C); w_qkv: (C, 3C); w_proj: (C, C); b_proj: (C,)."""
    B, N, C = x.shape
    assert C % num_heads == 0
    D = C // num_heads
    scale = D ** (-0.5)

    # Query tile: multiple of 8 sublanes, capped by q_tile, never larger than
    # needed; the sequence is zero-padded to a whole number of tiles (padded
    # key columns are masked inside the kernel, padded rows sliced off below).
    tq = min(q_tile, _round_up(N, 8))
    tq = _round_up(tq, 8)
    n_pad = _round_up(N, tq)
    nq = n_pad // tq

    x_p = x if n_pad == N else jnp.pad(x, ((0, 0), (0, n_pad - N), (0, 0)))
    x_bf = x_p.astype(jnp.bfloat16)

    # bf16 weights, f32 accumulation in-kernel. Fold the attention scale into
    # w_q on the host (before the cast) so the kernel never touches it.
    w_q = (w_qkv[:, 0 * C:1 * C] * scale).astype(jnp.bfloat16)
    w_k = w_qkv[:, 1 * C:2 * C].astype(jnp.bfloat16)
    w_v = w_qkv[:, 2 * C:3 * C].astype(jnp.bfloat16)
    w_p = w_proj.astype(jnp.bfloat16)
    b_p = b_proj.reshape(1, C).astype(jnp.float32)

    kernel = functools.partial(_attention_kernel, num_heads=num_heads,
                               seq_len=N, q_tile=tq)

    def build(single_buffer_weights):
        wkw = {}
        if single_buffer_weights and hasattr(pl, "Buffered"):
            # Constant-index blocks are never re-fetched; single-buffer them.
            wkw = dict(pipeline_mode=pl.Buffered(1))
        grid_spec = pltpu.PrefetchScalarGridSpec(
            num_scalar_prefetch=0,
            grid=(B, nq),
            in_specs=[
                pl.BlockSpec((1, n_pad, C), lambda b, qi: (b, 0, 0)),  # x (full seq)
                pl.BlockSpec((C, C), lambda b, qi: (0, 0), **wkw),     # w_q (scaled)
                pl.BlockSpec((C, C), lambda b, qi: (0, 0), **wkw),     # w_k
                pl.BlockSpec((C, C), lambda b, qi: (0, 0), **wkw),     # w_v
                pl.BlockSpec((C, C), lambda b, qi: (0, 0), **wkw),     # w_proj
                pl.BlockSpec((1, C), lambda b, qi: (0, 0), **wkw),     # b_proj
            ],
            out_specs=pl.BlockSpec((1, tq, C), lambda b, qi: (b, qi, 0)),
            scratch_shapes=[
                pltpu.VMEM((num_heads, n_pad, D), jnp.bfloat16),       # K, head-major
                pltpu.VMEM((num_heads, n_pad, D), jnp.bfloat16),       # V, head-major
            ],
        )
        return pl.pallas_call(
            kernel,
            out_shape=jax.ShapeDtypeStruct((B, n_pad, C), x.dtype),
            grid_spec=grid_spec,
            compiler_params=pltpu.CompilerParams(
                # qi carries the K/V scratch -> "arbitrary"; b stays "parallel".
                dimension_semantics=("parallel", "arbitrary"),
                vmem_limit_bytes=_pick_vmem_limit(),
            ),
        )

    try:
        out = build(True)(x_bf, w_q, w_k, w_v, w_p, b_p)
    except Exception:
        # pl.Buffered(1) single-buffering is a VMEM optimization only; fall back
        # to default double-buffering if this Pallas version rejects it.
        out = build(False)(x_bf, w_q, w_k, w_v, w_p, b_p)

    return out[:, :N, :]


def attention_reference(x, w_qkv, w_proj, b_proj, *, num_heads):
    """Pure-JAX f32 reference mirroring the PyTorch forward (dropout p=0)."""
    B, N, C = x.shape
    D = C // num_heads
    scale = D ** (-0.5)
    qkv = x @ w_qkv                                        # (B, N, 3C)
    qkv = qkv.reshape(B, N, 3, num_heads, D).transpose(2, 0, 3, 1, 4)
    q, k, v = qkv[0], qkv[1], qkv[2]                       # (B, H, N, D)
    attn = jnp.einsum("bhnd,bhmd->bhnm", q, k) * scale
    attn = jax.nn.softmax(attn, axis=-1)
    out = jnp.einsum("bhnm,bhmd->bhnd", attn, v)           # (B, H, N, D)
    out = out.transpose(0, 2, 1, 3).reshape(B, N, C)
    return out @ w_proj + b_proj


if __name__ == "__main__":
    NUM_HEADS = 4
    C = 32

    key = jax.random.PRNGKey(0)
    kx, kq, kp, kb, kx2 = jax.random.split(key, 5)

    # nn.Linear(dim, 3*dim, bias=False), nn.Linear(dim, dim, bias=True);
    # stored as (in, out) so y = x @ W + b.
    w_qkv = jax.random.normal(kq, (C, 3 * C), dtype=jnp.float32) * 0.05
    w_proj = jax.random.normal(kp, (C, C), dtype=jnp.float32) * 0.05
    b_proj = jax.random.normal(kb, (C,), dtype=jnp.float32) * 0.05

    # Config 1: small shapes, single tile, no padding.
    B1, N1 = 2, 8
    x1 = jax.random.normal(kx, (B1, N1, C), dtype=jnp.float32)
    out1 = attention_pallas(x1, w_qkv, w_proj, b_proj, num_heads=NUM_HEADS)
    out1 = jax.block_until_ready(out1)
    ref1 = attention_reference(x1, w_qkv, w_proj, b_proj, num_heads=NUM_HEADS)
    assert out1.shape == (B1, N1, C)
    # bf16 compute (f32 accumulation) vs f32 reference -> loosened tolerance.
    assert jnp.allclose(out1, ref1, atol=3e-2, rtol=3e-2), "mismatch vs reference (cfg1)"

    # Config 2: exercises query tiling, K/V-scratch reuse across q-tiles and
    # padded-key masking (N=24 padded to 32, two q-tiles of 16).
    B2, N2 = 2, 24
    x2 = jax.random.normal(kx2, (B2, N2, C), dtype=jnp.float32)
    out2 = attention_pallas(x2, w_qkv, w_proj, b_proj, num_heads=NUM_HEADS, q_tile=16)
    out2 = jax.block_until_ready(out2)
    ref2 = attention_reference(x2, w_qkv, w_proj, b_proj, num_heads=NUM_HEADS)
    assert out2.shape == (B2, N2, C)
    assert jnp.allclose(out2, ref2, atol=3e-2, rtol=3e-2), "mismatch vs reference (cfg2)"

    print("KERNEL_OK")
</pallas_src>

<mosaic_0001>
module attributes {stable_mosaic.version = 11 : i64} {
  func.func @_attention_kernel(%arg0: i32, %arg1: i32, %arg2: memref<1x8x32xbf16, #tpu.memory_space<vmem>>, %arg3: memref<32x32xbf16, #tpu.memory_space<vmem>>, %arg4: memref<32x32xbf16, #tpu.memory_space<vmem>>, %arg5: memref<32x32xbf16, #tpu.memory_space<vmem>>, %arg6: memref<32x32xbf16, #tpu.memory_space<vmem>>, %arg7: memref<1x32xf32, #tpu.memory_space<vmem>>, %arg8: memref<1x8x32xf32, #tpu.memory_space<vmem>>, %arg9: memref<4x8x8xbf16, #tpu.memory_space<vmem>>, %arg10: memref<4x8x8xbf16, #tpu.memory_space<vmem>>) attributes {dimension_semantics = [#tpu.dimension_semantics<parallel>, #tpu.dimension_semantics<arbitrary>], iteration_bounds = array<i64: 2, 1>, scalar_prefetch = 0 : i64, scratch_operands = 2 : i64, tpu.core_type = #tpu.core_type<tc>, window_params = [{transform_indices = @transform_0, window_bounds = array<i64: 1, 8, 32>}, {pipeline_mode = #tpu.pipeline_mode<synchronous>, transform_indices = @transform_1, window_bounds = array<i64: 32, 32>}, {pipeline_mode = #tpu.pipeline_mode<synchronous>, transform_indices = @transform_2, window_bounds = array<i64: 32, 32>}, {pipeline_mode = #tpu.pipeline_mode<synchronous>, transform_indices = @transform_3, window_bounds = array<i64: 32, 32>}, {pipeline_mode = #tpu.pipeline_mode<synchronous>, transform_indices = @transform_4, window_bounds = array<i64: 32, 32>}, {pipeline_mode = #tpu.pipeline_mode<synchronous>, transform_indices = @transform_5, window_bounds = array<i64: 1, 32>}, {transform_indices = @transform_6, window_bounds = array<i64: 1, 8, 32>}]} {
    %c0_i32 = arith.constant 0 : i32
    %0 = arith.cmpi eq, %arg1, %c0_i32 : i32
    %1 = arith.extui %0 : i1 to i32
    %c0_i32_0 = arith.constant 0 : i32
    %2 = arith.cmpi ne, %1, %c0_i32_0 : i32
    scf.if %2 {
      %c0_22 = arith.constant 0 : index
      %c0_23 = arith.constant 0 : index
      %c0_24 = arith.constant 0 : index
      %53 = vector.load %arg2[%c0_22, %c0_23, %c0_24] : memref<1x8x32xbf16, #tpu.memory_space<vmem>>, vector<1x8x32xbf16>
      %54 = vector.shape_cast %53 : vector<1x8x32xbf16> to vector<8x32xbf16>
      %c0_25 = arith.constant 0 : index
      %c0_26 = arith.constant 0 : index
      %55 = vector.load %arg4[%c0_25, %c0_26] : memref<32x32xbf16, #tpu.memory_space<vmem>>, vector<32x32xbf16>
      %cst_27 = arith.constant dense<0.000000e+00> : vector<8x32xf32>
      %56 = tpu.matmul %54, %55, %cst_27 {dimension_numbers = #tpu.dot_dimension_numbers<[1], [0], [0], [1], [0, 0, 1, 1], [], []>} : vector<8x32xbf16>, vector<32x32xbf16>, vector<8x32xf32> -> vector<8x32xf32>
      %c0_28 = arith.constant 0 : index
      %c0_29 = arith.constant 0 : index
      %57 = vector.load %arg5[%c0_28, %c0_29] : memref<32x32xbf16, #tpu.memory_space<vmem>>, vector<32x32xbf16>
      %cst_30 = arith.constant dense<0.000000e+00> : vector<8x32xf32>
      %58 = tpu.matmul %54, %57, %cst_30 {dimension_numbers = #tpu.dot_dimension_numbers<[1], [0], [0], [1], [0, 0, 1, 1], [], []>} : vector<8x32xbf16>, vector<32x32xbf16>, vector<8x32xf32> -> vector<8x32xf32>
      %59 = arith.truncf %56 : vector<8x32xf32> to vector<8x32xbf16>
      %60 = arith.truncf %58 : vector<8x32xf32> to vector<8x32xbf16>
      %61 = vector.extract_strided_slice %59 {offsets = [0, 0], sizes = [8, 8], strides = [1, 1]} : vector<8x32xbf16> to vector<8x8xbf16>
      %c0_31 = arith.constant 0 : index
      %c0_32 = arith.constant 0 : index
      %c0_33 = arith.constant 0 : index
      %62 = vector.load %arg9[%c0_31, %c0_32, %c0_33] : memref<4x8x8xbf16, #tpu.memory_space<vmem>>, vector<1x8x8xbf16>
      %63 = vector.shape_cast %62 : vector<1x8x8xbf16> to vector<8x8xbf16>
      %64 = vector.shape_cast %61 : vector<8x8xbf16> to vector<1x8x8xbf16>
      tpu.vector_store %arg9[%c0_31, %c0_32, %c0_33], %64 {strides = array<i32>} : memref<4x8x8xbf16, #tpu.memory_space<vmem>>, vector<1x8x8xbf16>,
      %65 = vector.extract_strided_slice %60 {offsets = [0, 0], sizes = [8, 8], strides = [1, 1]} : vector<8x32xbf16> to vector<8x8xbf16>
      %c0_34 = arith.constant 0 : index
      %c0_35 = arith.constant 0 : index
      %c0_36 = arith.constant 0 : index
      %66 = vector.load %arg10[%c0_34, %c0_35, %c0_36] : memref<4x8x8xbf16, #tpu.memory_space<vmem>>, vector<1x8x8xbf16>
      %67 = vector.shape_cast %66 : vector<1x8x8xbf16> to vector<8x8xbf16>
      %68 = vector.shape_cast %65 : vector<8x8xbf16> to vector<1x8x8xbf16>
      tpu.vector_store %arg10[%c0_34, %c0_35, %c0_36], %68 {strides = array<i32>} : memref<4x8x8xbf16, #tpu.memory_space<vmem>>, vector<1x8x8xbf16>,
      %69 = vector.extract_strided_slice %59 {offsets = [0, 8], sizes = [8, 8], strides = [1, 1]} : vector<8x32xbf16> to vector<8x8xbf16>
      %c1 = arith.constant 1 : index
      %c0_37 = arith.constant 0 : index
      %c0_38 = arith.constant 0 : index
      %70 = vector.load %arg9[%c1, %c0_37, %c0_38] : memref<4x8x8xbf16, #tpu.memory_space<vmem>>, vector<1x8x8xbf16>
      %71 = vector.shape_cast %70 : vector<1x8x8xbf16> to vector<8x8xbf16>
      %72 = vector.shape_cast %69 : vector<8x8xbf16> to vector<1x8x8xbf16>
      tpu.vector_store %arg9[%c1, %c0_37, %c0_38], %72 {strides = array<i32>} : memref<4x8x8xbf16, #tpu.memory_space<vmem>>, vector<1x8x8xbf16>,
      %73 = vector.extract_strided_slice %60 {offsets = [0, 8], sizes = [8, 8], strides = [1, 1]} : vector<8x32xbf16> to vector<8x8xbf16>
      %c1_39 = arith.constant 1 : index
      %c0_40 = arith.constant 0 : index
      %c0_41 = arith.constant 0 : index
      %74 = vector.load %arg10[%c1_39, %c0_40, %c0_41] : memref<4x8x8xbf16, #tpu.memory_space<vmem>>, vector<1x8x8xbf16>
      %75 = vector.shape_cast %74 : vector<1x8x8xbf16> to vector<8x8xbf16>
      %76 = vector.shape_cast %73 : vector<8x8xbf16> to vector<1x8x8xbf16>
      tpu.vector_store %arg10[%c1_39, %c0_40, %c0_41], %76 {strides = array<i32>} : memref<4x8x8xbf16, #tpu.memory_space<vmem>>, vector<1x8x8xbf16>,
      %77 = vector.extract_strided_slice %59 {offsets = [0, 16], sizes = [8, 8], strides = [1, 1]} : vector<8x32xbf16> to vector<8x8xbf16>
      %c2 = arith.constant 2 : index
      %c0_42 = arith.constant 0 : index
      %c0_43 = arith.constant 0 : index
      %78 = vector.load %arg9[%c2, %c0_42, %c0_43] : memref<4x8x8xbf16, #tpu.memory_space<vmem>>, vector<1x8x8xbf16>
      %79 = vector.shape_cast %78 : vector<1x8x8xbf16> to vector<8x8xbf16>
      %80 = vector.shape_cast %77 : vector<8x8xbf16> to vector<1x8x8xbf16>
      tpu.vector_store %arg9[%c2, %c0_42, %c0_43], %80 {strides = array<i32>} : memref<4x8x8xbf16, #tpu.memory_space<vmem>>, vector<1x8x8xbf16>,
      %81 = vector.extract_strided_slice %60 {offsets = [0, 16], sizes = [8, 8], strides = [1, 1]} : vector<8x32xbf16> to vector<8x8xbf16>
      %c2_44 = arith.constant 2 : index
      %c0_45 = arith.constant 0 : index
      %c0_46 = arith.constant 0 : index
      %82 = vector.load %arg10[%c2_44, %c0_45, %c0_46] : memref<4x8x8xbf16, #tpu.memory_space<vmem>>, vector<1x8x8xbf16>
      %83 = vector.shape_cast %82 : vector<1x8x8xbf16> to vector<8x8xbf16>
      %84 = vector.shape_cast %81 : vector<8x8xbf16> to vector<1x8x8xbf16>
      tpu.vector_store %arg10[%c2_44, %c0_45, %c0_46], %84 {strides = array<i32>} : memref<4x8x8xbf16, #tpu.memory_space<vmem>>, vector<1x8x8xbf16>,
      %85 = vector.extract_strided_slice %59 {offsets = [0, 24], sizes = [8, 8], strides = [1, 1]} : vector<8x32xbf16> to vector<8x8xbf16>
      %c3 = arith.constant 3 : index
      %c0_47 = arith.constant 0 : index
      %c0_48 = arith.constant 0 : index
      %86 = vector.load %arg9[%c3, %c0_47, %c0_48] : memref<4x8x8xbf16, #tpu.memory_space<vmem>>, vector<1x8x8xbf16>
      %87 = vector.shape_cast %86 : vector<1x8x8xbf16> to vector<8x8xbf16>
      %88 = vector.shape_cast %85 : vector<8x8xbf16> to vector<1x8x8xbf16>
      tpu.vector_store %arg9[%c3, %c0_47, %c0_48], %88 {strides = array<i32>} : memref<4x8x8xbf16, #tpu.memory_space<vmem>>, vector<1x8x8xbf16>,
      %89 = vector.extract_strided_slice %60 {offsets = [0, 24], sizes = [8, 8], strides = [1, 1]} : vector<8x32xbf16> to vector<8x8xbf16>
      %c3_49 = arith.constant 3 : index
      %c0_50 = arith.constant 0 : index
      %c0_51 = arith.constant 0 : index
      %90 = vector.load %arg10[%c3_49, %c0_50, %c0_51] : memref<4x8x8xbf16, #tpu.memory_space<vmem>>, vector<1x8x8xbf16>
      %91 = vector.shape_cast %90 : vector<1x8x8xbf16> to vector<8x8xbf16>
      %92 = vector.shape_cast %89 : vector<8x8xbf16> to vector<1x8x8xbf16>
      tpu.vector_store %arg10[%c3_49, %c0_50, %c0_51], %92 {strides = array<i32>} : memref<4x8x8xbf16, #tpu.memory_space<vmem>>, vector<1x8x8xbf16>,
    } else {
    }
    %c8_i32 = arith.constant 8 : i32
    %3 = arith.muli %arg1, %c8_i32 : i32
    %4 = tpu.assume_multiple %3, 8 : i32
    %c0 = arith.constant 0 : index
    %5 = arith.index_cast %4 : i32 to index
    %c0_1 = arith.constant 0 : index
    %6 = vector.load %arg2[%c0, %5, %c0_1] : memref<1x8x32xbf16, #tpu.memory_space<vmem>>, vector<1x8x32xbf16>
    %7 = vector.shape_cast %6 : vector<1x8x32xbf16> to vector<8x32xbf16>
    %c0_2 = arith.constant 0 : index
    %c0_3 = arith.constant 0 : index
    %8 = vector.load %arg3[%c0_2, %c0_3] : memref<32x32xbf16, #tpu.memory_space<vmem>>, vector<32x32xbf16>
    %cst = arith.constant dense<0.000000e+00> : vector<8x32xf32>
    %9 = tpu.matmul %7, %8, %cst {dimension_numbers = #tpu.dot_dimension_numbers<[1], [0], [0], [1], [0, 0, 1, 1], [], []>} : vector<8x32xbf16>, vector<32x32xbf16>, vector<8x32xf32> -> vector<8x32xf32>
    %10 = arith.truncf %9 : vector<8x32xf32> to vector<8x32xbf16>
    %11 = vector.extract_strided_slice %10 {offsets = [0, 0], sizes = [8, 8], strides = [1, 1]} : vector<8x32xbf16> to vector<8x8xbf16>
    %12 = vector.extract_strided_slice %10 {offsets = [0, 8], sizes = [8, 8], strides = [1, 1]} : vector<8x32xbf16> to vector<8x8xbf16>
    %13 = vector.extract_strided_slice %10 {offsets = [0, 16], sizes = [8, 8], strides = [1, 1]} : vector<8x32xbf16> to vector<8x8xbf16>
    %14 = vector.extract_strided_slice %10 {offsets = [0, 24], sizes = [8, 8], strides = [1, 1]} : vector<8x32xbf16> to vector<8x8xbf16>
    %15 = vector.shape_cast %11 : vector<8x8xbf16> to vector<1x8x8xbf16>
    %16 = vector.shape_cast %12 : vector<8x8xbf16> to vector<1x8x8xbf16>
    %17 = vector.shape_cast %13 : vector<8x8xbf16> to vector<1x8x8xbf16>
    %18 = vector.shape_cast %14 : vector<8x8xbf16> to vector<1x8x8xbf16>
    %19 = tpu.concatenate %15, %16, %17, %18 in 0 : vector<1x8x8xbf16>, vector<1x8x8xbf16>, vector<1x8x8xbf16>, vector<1x8x8xbf16> -> vector<4x8x8xbf16>
    %c0_4 = arith.constant 0 : index
    %c0_5 = arith.constant 0 : index
    %c0_6 = arith.constant 0 : index
    %20 = vector.load %arg9[%c0_4, %c0_5, %c0_6] : memref<4x8x8xbf16, #tpu.memory_space<vmem>>, vector<4x8x8xbf16>
    "tpu.trace_start"() <{level = 10 : i32, message = "htd,hnd->htn"}> : () -> ()
    %cst_7 = arith.constant dense<0.000000e+00> : vector<4x8x8xf32>
    %21 = tpu.matmul %19, %20, %cst_7 {dimension_numbers = #tpu.dot_dimension_numbers<[2], [2], [1], [1], [0, 0, 0, 1, 1, 1], [0], [0]>} : vector<4x8x8xbf16>, vector<4x8x8xbf16>, vector<4x8x8xf32> -> vector<4x8x8xf32>
    "tpu.trace_stop"() : () -> ()
    %cst_8 = arith.constant dense<0xFF800000> : vector<4x8xf32>
    %22 = vector.multi_reduction <maximumf>, %21, %cst_8 [2] : vector<4x8x8xf32> to vector<4x8xf32>
    %23 = vector.shape_cast %22 : vector<4x8xf32> to vector<4x8x1xf32>
    %24 = vector.broadcast %23 : vector<4x8x1xf32> to vector<4x8x8xf32>
    %25 = arith.subf %21, %24 : vector<4x8x8xf32>
    %26 = math.exp %25 : vector<4x8x8xf32>
    %cst_9 = arith.constant dense<0.000000e+00> : vector<4x8xf32>
    %27 = vector.multi_reduction <add>, %26, %cst_9 [2] : vector<4x8x8xf32> to vector<4x8xf32>
    %28 = vector.shape_cast %27 : vector<4x8xf32> to vector<4x8x1xf32>
    %29 = tpu.reciprocal %28 {approx = true} : vector<4x8x1xf32> -> vector<4x8x1xf32>
    %30 = vector.broadcast %29 : vector<4x8x1xf32> to vector<4x8x8xf32>
    %31 = arith.mulf %26, %30 : vector<4x8x8xf32>
    %32 = arith.truncf %31 : vector<4x8x8xf32> to vector<4x8x8xbf16>
    %c0_10 = arith.constant 0 : index
    %c0_11 = arith.constant 0 : index
    %c0_12 = arith.constant 0 : index
    %33 = vector.load %arg10[%c0_10, %c0_11, %c0_12] : memref<4x8x8xbf16, #tpu.memory_space<vmem>>, vector<4x8x8xbf16>
    "tpu.trace_start"() <{level = 10 : i32, message = "htn,hnd->htd"}> : () -> ()
    %cst_13 = arith.constant dense<0.000000e+00> : vector<4x8x8xf32>
    %34 = tpu.matmul %32, %33, %cst_13 {dimension_numbers = #tpu.dot_dimension_numbers<[2], [1], [1], [2], [0, 0, 0, 1, 1, 2], [0], [0]>} : vector<4x8x8xbf16>, vector<4x8x8xbf16>, vector<4x8x8xf32> -> vector<4x8x8xf32>
    "tpu.trace_stop"() : () -> ()
    %35 = arith.truncf %34 : vector<4x8x8xf32> to vector<4x8x8xbf16>
    %36 = vector.extract_strided_slice %35 {offsets = [0, 0, 0], sizes = [1, 8, 8], strides = [1, 1, 1]} : vector<4x8x8xbf16> to vector<1x8x8xbf16>
    %37 = vector.shape_cast %36 : vector<1x8x8xbf16> to vector<8x8xbf16>
    %38 = vector.extract_strided_slice %35 {offsets = [1, 0, 0], sizes = [1, 8, 8], strides = [1, 1, 1]} : vector<4x8x8xbf16> to vector<1x8x8xbf16>
    %39 = vector.shape_cast %38 : vector<1x8x8xbf16> to vector<8x8xbf16>
    %40 = vector.extract_strided_slice %35 {offsets = [2, 0, 0], sizes = [1, 8, 8], strides = [1, 1, 1]} : vector<4x8x8xbf16> to vector<1x8x8xbf16>
    %41 = vector.shape_cast %40 : vector<1x8x8xbf16> to vector<8x8xbf16>
    %42 = vector.extract_strided_slice %35 {offsets = [3, 0, 0], sizes = [1, 8, 8], strides = [1, 1, 1]} : vector<4x8x8xbf16> to vector<1x8x8xbf16>
    %43 = vector.shape_cast %42 : vector<1x8x8xbf16> to vector<8x8xbf16>
    %44 = tpu.concatenate %37, %39, %41, %43 in 1 : vector<8x8xbf16>, vector<8x8xbf16>, vector<8x8xbf16>, vector<8x8xbf16> -> vector<8x32xbf16>
    %c0_14 = arith.constant 0 : index
    %c0_15 = arith.constant 0 : index
    %45 = vector.load %arg6[%c0_14, %c0_15] : memref<32x32xbf16, #tpu.memory_space<vmem>>, vector<32x32xbf16>
    %cst_16 = arith.constant dense<0.000000e+00> : vector<8x32xf32>
    %46 = tpu.matmul %44, %45, %cst_16 {dimension_numbers = #tpu.dot_dimension_numbers<[1], [0], [0], [1], [0, 0, 1, 1], [], []>} : vector<8x32xbf16>, vector<32x32xbf16>, vector<8x32xf32> -> vector<8x32xf32>
    %c0_17 = arith.constant 0 : index
    %c0_18 = arith.constant 0 : index
    %47 = vector.load %arg7[%c0_17, %c0_18] : memref<1x32xf32, #tpu.memory_space<vmem>>, vector<1x32xf32>
    %48 = vector.broadcast %47 : vector<1x32xf32> to vector<8x32xf32>
    %49 = arith.addf %46, %48 : vector<8x32xf32>
    %c0_19 = arith.constant 0 : index
    %c0_20 = arith.constant 0 : index
    %c0_21 = arith.constant 0 : index
    %50 = vector.load %arg8[%c0_19, %c0_20, %c0_21] : memref<1x8x32xf32, #tpu.memory_space<vmem>>, vector<1x8x32xf32>
    %51 = vector.shape_cast %50 : vector<1x8x32xf32> to vector<8x32xf32>
    %52 = vector.shape_cast %49 : vector<8x32xf32> to vector<1x8x32xf32>
    tpu.vector_store %arg8[%c0_19, %c0_20, %c0_21], %52 {strides = array<i32>} : memref<1x8x32xf32, #tpu.memory_space<vmem>>, vector<1x8x32xf32>,
    return
  }
  func.func @transform_0(%arg0: i32, %arg1: i32) -> (i32, i32, i32) {
    %c0_i32 = arith.constant 0 : i32
    %c0_i32_0 = arith.constant 0 : i32
    %c0_i32_1 = arith.constant 0 : i32
    return %arg0, %c0_i32, %c0_i32_0 : i32, i32, i32
  }
  func.func @transform_1(%arg0: i32, %arg1: i32) -> (i32, i32) {
    %c0_i32 = arith.constant 0 : i32
    %c0_i32_0 = arith.constant 0 : i32
    %c0_i32_1 = arith.constant 0 : i32
    return %c0_i32, %c0_i32_0 : i32, i32
  }
  func.func @transform_2(%arg0: i32, %arg1: i32) -> (i32, i32) {
    %c0_i32 = arith.constant 0 : i32
    %c0_i32_0 = arith.constant 0 : i32
    %c0_i32_1 = arith.constant 0 : i32
    return %c0_i32, %c0_i32_0 : i32, i32
  }
  func.func @transform_3(%arg0: i32, %arg1: i32) -> (i32, i32) {
    %c0_i32 = arith.constant 0 : i32
    %c0_i32_0 = arith.constant 0 : i32
    %c0_i32_1 = arith.constant 0 : i32
    return %c0_i32, %c0_i32_0 : i32, i32
  }
  func.func @transform_4(%arg0: i32, %arg1: i32) -> (i32, i32) {
    %c0_i32 = arith.constant 0 : i32
    %c0_i32_0 = arith.constant 0 : i32
    %c0_i32_1 = arith.constant 0 : i32
    return %c0_i32, %c0_i32_0 : i32, i32
  }
  func.func @transform_5(%arg0: i32, %arg1: i32) -> (i32, i32) {
    %c0_i32 = arith.constant 0 : i32
    %c0_i32_0 = arith.constant 0 : i32
    %c0_i32_1 = arith.constant 0 : i32
    return %c0_i32, %c0_i32_0 : i32, i32
  }
  func.func @transform_6(%arg0: i32, %arg1: i32) -> (i32, i32, i32) {
    %c0_i32 = arith.constant 0 : i32
    %c0_i32_0 = arith.constant 0 : i32
    return %arg0, %arg1, %c0_i32 : i32, i32, i32
  }
}

module attributes {stable_mosaic.version = 11 : i64} {
  func.func @_attention_kernel(%arg0: i32, %arg1: i32, %arg2: memref<1x8x32xbf16, #tpu.memory_space<vmem>>, %arg3: memref<32x32xbf16, #tpu.memory_space<vmem>>, %arg4: memref<32x32xbf16, #tpu.memory_space<vmem>>, %arg5: memref<32x32xbf16, #tpu.memory_space<vmem>>, %arg6: memref<32x32xbf16, #tpu.memory_space<vmem>>, %arg7: memref<1x32xf32, #tpu.memory_space<vmem>>, %arg8: memref<1x8x32xf32, #tpu.memory_space<vmem>>, %arg9: memref<4x8x8xbf16, #tpu.memory_space<vmem>>, %arg10: memref<4x8x8xbf16, #tpu.memory_space<vmem>>) attributes {dimension_semantics = [#tpu.dimension_semantics<parallel>, #tpu.dimension_semantics<arbitrary>], iteration_bounds = array<i64: 2, 1>, scalar_prefetch = 0 : i64, scratch_operands = 2 : i64, tpu.core_type = #tpu.core_type<tc>, window_params = [{transform_indices = @transform_0, window_bounds = array<i64: 1, 8, 32>}, {pipeline_mode = #tpu.pipeline_mode<synchronous>, transform_indices = @transform_1, window_bounds = array<i64: 32, 32>}, {pipeline_mode = #tpu.pipeline_mode<synchronous>, transform_indices = @transform_2, window_bounds = array<i64: 32, 32>}, {pipeline_mode = #tpu.pipeline_mode<synchronous>, transform_indices = @transform_3, window_bounds = array<i64: 32, 32>}, {pipeline_mode = #tpu.pipeline_mode<synchronous>, transform_indices = @transform_4, window_bounds = array<i64: 32, 32>}, {pipeline_mode = #tpu.pipeline_mode<synchronous>, transform_indices = @transform_5, window_bounds = array<i64: 1, 32>}, {transform_indices = @transform_6, window_bounds = array<i64: 1, 8, 32>}]} {
    %c0_i32 = arith.constant 0 : i32
    %0 = arith.cmpi eq, %arg1, %c0_i32 : i32
    %1 = arith.extui %0 : i1 to i32
    %c0_i32_0 = arith.constant 0 : i32
    %2 = arith.cmpi ne, %1, %c0_i32_0 : i32
    scf.if %2 {
      %c0_22 = arith.constant 0 : index
      %c0_23 = arith.constant 0 : index
      %c0_24 = arith.constant 0 : index
      %53 = vector.load %arg2[%c0_22, %c0_23, %c0_24] : memref<1x8x32xbf16, #tpu.memory_space<vmem>>, vector<1x8x32xbf16>
      %54 = vector.shape_cast %53 : vector<1x8x32xbf16> to vector<8x32xbf16>
      %c0_25 = arith.constant 0 : index
      %c0_26 = arith.constant 0 : index
      %55 = vector.load %arg4[%c0_25, %c0_26] : memref<32x32xbf16, #tpu.memory_space<vmem>>, vector<32x32xbf16>
      %cst_27 = arith.constant dense<0.000000e+00> : vector<8x32xf32>
      %56 = tpu.matmul %54, %55, %cst_27 {dimension_numbers = #tpu.dot_dimension_numbers<[1], [0], [0], [1], [0, 0, 1, 1], [], []>} : vector<8x32xbf16>, vector<32x32xbf16>, vector<8x32xf32> -> vector<8x32xf32>
      %c0_28 = arith.constant 0 : index
      %c0_29 = arith.constant 0 : index
      %57 = vector.load %arg5[%c0_28, %c0_29] : memref<32x32xbf16, #tpu.memory_space<vmem>>, vector<32x32xbf16>
      %cst_30 = arith.constant dense<0.000000e+00> : vector<8x32xf32>
      %58 = tpu.matmul %54, %57, %cst_30 {dimension_numbers = #tpu.dot_dimension_numbers<[1], [0], [0], [1], [0, 0, 1, 1], [], []>} : vector<8x32xbf16>, vector<32x32xbf16>, vector<8x32xf32> -> vector<8x32xf32>
      %59 = arith.truncf %56 : vector<8x32xf32> to vector<8x32xbf16>
      %60 = arith.truncf %58 : vector<8x32xf32> to vector<8x32xbf16>
      %61 = vector.extract_strided_slice %59 {offsets = [0, 0], sizes = [8, 8], strides = [1, 1]} : vector<8x32xbf16> to vector<8x8xbf16>
      %c0_31 = arith.constant 0 : index
      %c0_32 = arith.constant 0 : index
      %c0_33 = arith.constant 0 : index
      %62 = vector.load %arg9[%c0_31, %c0_32, %c0_33] : memref<4x8x8xbf16, #tpu.memory_space<vmem>>, vector<1x8x8xbf16>
      %63 = vector.shape_cast %62 : vector<1x8x8xbf16> to vector<8x8xbf16>
      %64 = vector.shape_cast %61 : vector<8x8xbf16> to vector<1x8x8xbf16>
      tpu.vector_store %arg9[%c0_31, %c0_32, %c0_33], %64 {strides = array<i32>} : memref<4x8x8xbf16, #tpu.memory_space<vmem>>, vector<1x8x8xbf16>,
      %65 = vector.extract_strided_slice %60 {offsets = [0, 0], sizes = [8, 8], strides = [1, 1]} : vector<8x32xbf16> to vector<8x8xbf16>
      %c0_34 = arith.constant 0 : index
      %c0_35 = arith.constant 0 : index
      %c0_36 = arith.constant 0 : index
      %66 = vector.load %arg10[%c0_34, %c0_35, %c0_36] : memref<4x8x8xbf16, #tpu.memory_space<vmem>>, vector<1x8x8xbf16>
      %67 = vector.shape_cast %66 : vector<1x8x8xbf16> to vector<8x8xbf16>
      %68 = vector.shape_cast %65 : vector<8x8xbf16> to vector<1x8x8xbf16>
      tpu.vector_store %arg10[%c0_34, %c0_35, %c0_36], %68 {strides = array<i32>} : memref<4x8x8xbf16, #tpu.memory_space<vmem>>, vector<1x8x8xbf16>,
      %69 = vector.extract_strided_slice %59 {offsets = [0, 8], sizes = [8, 8], strides = [1, 1]} : vector<8x32xbf16> to vector<8x8xbf16>
      %c1 = arith.constant 1 : index
      %c0_37 = arith.constant 0 : index
      %c0_38 = arith.constant 0 : index
      %70 = vector.load %arg9[%c1, %c0_37, %c0_38] : memref<4x8x8xbf16, #tpu.memory_space<vmem>>, vector<1x8x8xbf16>
      %71 = vector.shape_cast %70 : vector<1x8x8xbf16> to vector<8x8xbf16>
      %72 = vector.shape_cast %69 : vector<8x8xbf16> to vector<1x8x8xbf16>
      tpu.vector_store %arg9[%c1, %c0_37, %c0_38], %72 {strides = array<i32>} : memref<4x8x8xbf16, #tpu.memory_space<vmem>>, vector<1x8x8xbf16>,
      %73 = vector.extract_strided_slice %60 {offsets = [0, 8], sizes = [8, 8], strides = [1, 1]} : vector<8x32xbf16> to vector<8x8xbf16>
      %c1_39 = arith.constant 1 : index
      %c0_40 = arith.constant 0 : index
      %c0_41 = arith.constant 0 : index
      %74 = vector.load %arg10[%c1_39, %c0_40, %c0_41] : memref<4x8x8xbf16, #tpu.memory_space<vmem>>, vector<1x8x8xbf16>
      %75 = vector.shape_cast %74 : vector<1x8x8xbf16> to vector<8x8xbf16>
      %76 = vector.shape_cast %73 : vector<8x8xbf16> to vector<1x8x8xbf16>
      tpu.vector_store %arg10[%c1_39, %c0_40, %c0_41], %76 {strides = array<i32>} : memref<4x8x8xbf16, #tpu.memory_space<vmem>>, vector<1x8x8xbf16>,
      %77 = vector.extract_strided_slice %59 {offsets = [0, 16], sizes = [8, 8], strides = [1, 1]} : vector<8x32xbf16> to vector<8x8xbf16>
      %c2 = arith.constant 2 : index
      %c0_42 = arith.constant 0 : index
      %c0_43 = arith.constant 0 : index
      %78 = vector.load %arg9[%c2, %c0_42, %c0_43] : memref<4x8x8xbf16, #tpu.memory_space<vmem>>, vector<1x8x8xbf16>
      %79 = vector.shape_cast %78 : vector<1x8x8xbf16> to vector<8x8xbf16>
      %80 = vector.shape_cast %77 : vector<8x8xbf16> to vector<1x8x8xbf16>
      tpu.vector_store %arg9[%c2, %c0_42, %c0_43], %80 {strides = array<i32>} : memref<4x8x8xbf16, #tpu.memory_space<vmem>>, vector<1x8x8xbf16>,
      %81 = vector.extract_strided_slice %60 {offsets = [0, 16], sizes = [8, 8], strides = [1, 1]} : vector<8x32xbf16> to vector<8x8xbf16>
      %c2_44 = arith.constant 2 : index
      %c0_45 = arith.constant 0 : index
      %c0_46 = arith.constant 0 : index
      %82 = vector.load %arg10[%c2_44, %c0_45, %c0_46] : memref<4x8x8xbf16, #tpu.memory_space<vmem>>, vector<1x8x8xbf16>
      %83 = vector.shape_cast %82 : vector<1x8x8xbf16> to vector<8x8xbf16>
      %84 = vector.shape_cast %81 : vector<8x8xbf16> to vector<1x8x8xbf16>
      tpu.vector_store %arg10[%c2_44, %c0_45, %c0_46], %84 {strides = array<i32>} : memref<4x8x8xbf16, #tpu.memory_space<vmem>>, vector<1x8x8xbf16>,
      %85 = vector.extract_strided_slice %59 {offsets = [0, 24], sizes = [8, 8], strides = [1, 1]} : vector<8x32xbf16> to vector<8x8xbf16>
      %c3 = arith.constant 3 : index
      %c0_47 = arith.constant 0 : index
      %c0_48 = arith.constant 0 : index
      %86 = vector.load %arg9[%c3, %c0_47, %c0_48] : memref<4x8x8xbf16, #tpu.memory_space<vmem>>, vector<1x8x8xbf16>
      %87 = vector.shape_cast %86 : vector<1x8x8xbf16> to vector<8x8xbf16>
      %88 = vector.shape_cast %85 : vector<8x8xbf16> to vector<1x8x8xbf16>
      tpu.vector_store %arg9[%c3, %c0_47, %c0_48], %88 {strides = array<i32>} : memref<4x8x8xbf16, #tpu.memory_space<vmem>>, vector<1x8x8xbf16>,
      %89 = vector.extract_strided_slice %60 {offsets = [0, 24], sizes = [8, 8], strides = [1, 1]} : vector<8x32xbf16> to vector<8x8xbf16>
      %c3_49 = arith.constant 3 : index
      %c0_50 = arith.constant 0 : index
      %c0_51 = arith.constant 0 : index
      %90 = vector.load %arg10[%c3_49, %c0_50, %c0_51] : memref<4x8x8xbf16, #tpu.memory_space<vmem>>, vector<1x8x8xbf16>
      %91 = vector.shape_cast %90 : vector<1x8x8xbf16> to vector<8x8xbf16>
      %92 = vector.shape_cast %89 : vector<8x8xbf16> to vector<1x8x8xbf16>
      tpu.vector_store %arg10[%c3_49, %c0_50, %c0_51], %92 {strides = array<i32>} : memref<4x8x8xbf16, #tpu.memory_space<vmem>>, vector<1x8x8xbf16>,
    } else {
    }
    %c8_i32 = arith.constant 8 : i32
    %3 = arith.muli %arg1, %c8_i32 : i32
    %4 = tpu.assume_multiple %3, 8 : i32
    %c0 = arith.constant 0 : index
    %5 = arith.index_cast %4 : i32 to index
    %c0_1 = arith.constant 0 : index
    %6 = vector.load %arg2[%c0, %5, %c0_1] : memref<1x8x32xbf16, #tpu.memory_space<vmem>>, vector<1x8x32xbf16>
    %7 = vector.shape_cast %6 : vector<1x8x32xbf16> to vector<8x32xbf16>
    %c0_2 = arith.constant 0 : index
    %c0_3 = arith.constant 0 : index
    %8 = vector.load %arg3[%c0_2, %c0_3] : memref<32x32xbf16, #tpu.memory_space<vmem>>, vector<32x32xbf16>
    %cst = arith.constant dense<0.000000e+00> : vector<8x32xf32>
    %9 = tpu.matmul %7, %8, %cst {dimension_numbers = #tpu.dot_dimension_numbers<[1], [0], [0], [1], [0, 0, 1, 1], [], []>} : vector<8x32xbf16>, vector<32x32xbf16>, vector<8x32xf32> -> vector<8x32xf32>
    %10 = arith.truncf %9 : vector<8x32xf32> to vector<8x32xbf16>
    %11 = vector.extract_strided_slice %10 {offsets = [0, 0], sizes = [8, 8], strides = [1, 1]} : vector<8x32xbf16> to vector<8x8xbf16>
    %12 = vector.extract_strided_slice %10 {offsets = [0, 8], sizes = [8, 8], strides = [1, 1]} : vector<8x32xbf16> to vector<8x8xbf16>
    %13 = vector.extract_strided_slice %10 {offsets = [0, 16], sizes = [8, 8], strides = [1, 1]} : vector<8x32xbf16> to vector<8x8xbf16>
    %14 = vector.extract_strided_slice %10 {offsets = [0, 24], sizes = [8, 8], strides = [1, 1]} : vector<8x32xbf16> to vector<8x8xbf16>
    %15 = vector.shape_cast %11 : vector<8x8xbf16> to vector<1x8x8xbf16>
    %16 = vector.shape_cast %12 : vector<8x8xbf16> to vector<1x8x8xbf16>
    %17 = vector.shape_cast %13 : vector<8x8xbf16> to vector<1x8x8xbf16>
    %18 = vector.shape_cast %14 : vector<8x8xbf16> to vector<1x8x8xbf16>
    %19 = tpu.concatenate %15, %16, %17, %18 in 0 : vector<1x8x8xbf16>, vector<1x8x8xbf16>, vector<1x8x8xbf16>, vector<1x8x8xbf16> -> vector<4x8x8xbf16>
    %c0_4 = arith.constant 0 : index
    %c0_5 = arith.constant 0 : index
    %c0_6 = arith.constant 0 : index
    %20 = vector.load %arg9[%c0_4, %c0_5, %c0_6] : memref<4x8x8xbf16, #tpu.memory_space<vmem>>, vector<4x8x8xbf16>
    "tpu.trace_start"() <{level = 10 : i32, message = "htd,hnd->htn"}> : () -> ()
    %cst_7 = arith.constant dense<0.000000e+00> : vector<4x8x8xf32>
    %21 = tpu.matmul %19, %20, %cst_7 {dimension_numbers = #tpu.dot_dimension_numbers<[2], [2], [1], [1], [0, 0, 0, 1, 1, 1], [0], [0]>} : vector<4x8x8xbf16>, vector<4x8x8xbf16>, vector<4x8x8xf32> -> vector<4x8x8xf32>
    "tpu.trace_stop"() : () -> ()
    %cst_8 = arith.constant dense<0xFF800000> : vector<4x8xf32>
    %22 = vector.multi_reduction <maximumf>, %21, %cst_8 [2] : vector<4x8x8xf32> to vector<4x8xf32>
    %23 = vector.shape_cast %22 : vector<4x8xf32> to vector<4x8x1xf32>
    %24 = vector.broadcast %23 : vector<4x8x1xf32> to vector<4x8x8xf32>
    %25 = arith.subf %21, %24 : vector<4x8x8xf32>
    %26 = math.exp %25 : vector<4x8x8xf32>
    %cst_9 = arith.constant dense<0.000000e+00> : vector<4x8xf32>
    %27 = vector.multi_reduction <add>, %26, %cst_9 [2] : vector<4x8x8xf32> to vector<4x8xf32>
    %28 = vector.shape_cast %27 : vector<4x8xf32> to vector<4x8x1xf32>
    %29 = tpu.reciprocal %28 {approx = true} : vector<4x8x1xf32> -> vector<4x8x1xf32>
    %30 = vector.broadcast %29 : vector<4x8x1xf32> to vector<4x8x8xf32>
    %31 = arith.mulf %26, %30 : vector<4x8x8xf32>
    %32 = arith.truncf %31 : vector<4x8x8xf32> to vector<4x8x8xbf16>
    %c0_10 = arith.constant 0 : index
    %c0_11 = arith.constant 0 : index
    %c0_12 = arith.constant 0 : index
    %33 = vector.load %arg10[%c0_10, %c0_11, %c0_12] : memref<4x8x8xbf16, #tpu.memory_space<vmem>>, vector<4x8x8xbf16>
    "tpu.trace_start"() <{level = 10 : i32, message = "htn,hnd->htd"}> : () -> ()
    %cst_13 = arith.constant dense<0.000000e+00> : vector<4x8x8xf32>
    %34 = tpu.matmul %32, %33, %cst_13 {dimension_numbers = #tpu.dot_dimension_numbers<[2], [1], [1], [2], [0, 0, 0, 1, 1, 2], [0], [0]>} : vector<4x8x8xbf16>, vector<4x8x8xbf16>, vector<4x8x8xf32> -> vector<4x8x8xf32>
    "tpu.trace_stop"() : () -> ()
    %35 = arith.truncf %34 : vector<4x8x8xf32> to vector<4x8x8xbf16>
    %36 = vector.extract_strided_slice %35 {offsets = [0, 0, 0], sizes = [1, 8, 8], strides = [1, 1, 1]} : vector<4x8x8xbf16> to vector<1x8x8xbf16>
    %37 = vector.shape_cast %36 : vector<1x8x8xbf16> to vector<8x8xbf16>
    %38 = vector.extract_strided_slice %35 {offsets = [1, 0, 0], sizes = [1, 8, 8], strides = [1, 1, 1]} : vector<4x8x8xbf16> to vector<1x8x8xbf16>
    %39 = vector.shape_cast %38 : vector<1x8x8xbf16> to vector<8x8xbf16>
    %40 = vector.extract_strided_slice %35 {offsets = [2, 0, 0], sizes = [1, 8, 8], strides = [1, 1, 1]} : vector<4x8x8xbf16> to vector<1x8x8xbf16>
    %41 = vector.shape_cast %40 : vector<1x8x8xbf16> to vector<8x8xbf16>
    %42 = vector.extract_strided_slice %35 {offsets = [3, 0, 0], sizes = [1, 8, 8], strides = [1, 1, 1]} : vector<4x8x8xbf16> to vector<1x8x8xbf16>
    %43 = vector.shape_cast %42 : vector<1x8x8xbf16> to vector<8x8xbf16>
    %44 = tpu.concatenate %37, %39, %41, %43 in 1 : vector<8x8xbf16>, vector<8x8xbf16>, vector<8x8xbf16>, vector<8x8xbf16> -> vector<8x32xbf16>
    %c0_14 = arith.constant 0 : index
    %c0_15 = arith.constant 0 : index
    %45 = vector.load %arg6[%c0_14, %c0_15] : memref<32x32xbf16, #tpu.memory_space<vmem>>, vector<32x32xbf16>
    %cst_16 = arith.constant dense<0.000000e+00> : vector<8x32xf32>
    %46 = tpu.matmul %44, %45, %cst_16 {dimension_numbers = #tpu.dot_dimension_numbers<[1], [0], [0], [1], [0, 0, 1, 1], [], []>} : vector<8x32xbf16>, vector<32x32xbf16>, vector<8x32xf32> -> vector<8x32xf32>
    %c0_17 = arith.constant 0 : index
    %c0_18 = arith.constant 0 : index
    %47 = vector.load %arg7[%c0_17, %c0_18] : memref<1x32xf32, #tpu.memory_space<vmem>>, vector<1x32xf32>
    %48 = vector.broadcast %47 : vector<1x32xf32> to vector<8x32xf32>
    %49 = arith.addf %46, %48 : vector<8x32xf32>
    %c0_19 = arith.constant 0 : index
    %c0_20 = arith.constant 0 : index
    %c0_21 = arith.constant 0 : index
    %50 = vector.load %arg8[%c0_19, %c0_20, %c0_21] : memref<1x8x32xf32, #tpu.memory_space<vmem>>, vector<1x8x32xf32>
    %51 = vector.shape_cast %50 : vector<1x8x32xf32> to vector<8x32xf32>
    %52 = vector.shape_cast %49 : vector<8x32xf32> to vector<1x8x32xf32>
    tpu.vector_store %arg8[%c0_19, %c0_20, %c0_21], %52 {strides = array<i32>} : memref<1x8x32xf32, #tpu.memory_space<vmem>>, vector<1x8x32xf32>,
    return
  }
  func.func @transform_0(%arg0: i32, %arg1: i32) -> (i32, i32, i32) {
    %c0_i32 = arith.constant 0 : i32
    %c0_i32_0 = arith.constant 0 : i32
    %c0_i32_1 = arith.constant 0 : i32
    return %arg0, %c0_i32, %c0_i32_0 : i32, i32, i32
  }
  func.func @transform_1(%arg0: i32, %arg1: i32) -> (i32, i32) {
    %c0_i32 = arith.constant 0 : i32
    %c0_i32_0 = arith.constant 0 : i32
    %c0_i32_1 = arith.constant 0 : i32
    return %c0_i32, %c0_i32_0 : i32, i32
  }
  func.func @transform_2(%arg0: i32, %arg1: i32) -> (i32, i32) {
    %c0_i32 = arith.constant 0 : i32
    %c0_i32_0 = arith.constant 0 : i32
    %c0_i32_1 = arith.constant 0 : i32
    return %c0_i32, %c0_i32_0 : i32, i32
  }
  func.func @transform_3(%arg0: i32, %arg1: i32) -> (i32, i32) {
    %c0_i32 = arith.constant 0 : i32
    %c0_i32_0 = arith.constant 0 : i32
    %c0_i32_1 = arith.constant 0 : i32
    return %c0_i32, %c0_i32_0 : i32, i32
  }
  func.func @transform_4(%arg0: i32, %arg1: i32) -> (i32, i32) {
    %c0_i32 = arith.constant 0 : i32
    %c0_i32_0 = arith.constant 0 : i32
    %c0_i32_1 = arith.constant 0 : i32
    return %c0_i32, %c0_i32_0 : i32, i32
  }
  func.func @transform_5(%arg0: i32, %arg1: i32) -> (i32, i32) {
    %c0_i32 = arith.constant 0 : i32
    %c0_i32_0 = arith.constant 0 : i32
    %c0_i32_1 = arith.constant 0 : i32
    return %c0_i32, %c0_i32_0 : i32, i32
  }
  func.func @transform_6(%arg0: i32, %arg1: i32) -> (i32, i32, i32) {
    %c0_i32 = arith.constant 0 : i32
    %c0_i32_0 = arith.constant 0 : i32
    return %arg0, %arg1, %c0_i32 : i32, i32, i32
  }
}

</mosaic_0001>

<bundles_post_ra>
// kernel: tpu_custom_call.1
= control target key start
LH: loop header
LB: loop body
LE: loop exit
PB: predicated region body
PF: predicated region fallthrough
CT: control target
= control target key end

     0   :  { %s2208_s0 = inlined_call_operand.hbm [shape: bf16[2,8,32], index: 0, kind: input, shape index: {}]   ;;  %s2209_s1 = inlined_call_operand.hbm [shape: bf16[32,32], index: 1, kind: input, shape index: {}]   ;;  %s2210_s2 = inlined_call_operand.hbm [shape: bf16[32,32], index: 2, kind: input, shape index: {}]   ;;  %s2211_s3 = inlined_call_operand.hbm [shape: bf16[32,32], index: 3, kind: input, shape index: {}]   ;;  %s2212_s4 = inlined_call_operand.hbm [shape: bf16[32,32], index: 4, kind: input, shape index: {}]   ;;  %s2213_s5 = inlined_call_operand.vmem [shape: f32[1,32], index: 5, kind: input, shape index: {}]   ;;  %s2214_s6 = inlined_call_operand.hbm [shape: f32[2,8,32], index: 6, kind: output, shape index: {}]  }
   0x1   :  { %2220 = sst [smem:[#allocation18_spill]] %s2209_s1 }
   0x2   :  { %11 = vsyncpa [#allocation5], 0 }
   0x3   :  { %13 = vsyncpa [#allocation5 + $0x1], 0 }
   0x4   :  { %14 = vsyncpa [#allocation8], 0 }
   0x5   :  { %15 = vsyncpa [#allocation11], 0 }
   0x6   :  { %16 = vsyncpa [#allocation6], 0 }
   0x7   :  { %18 = vsyncpa [#allocation6 + $0x1], 0  ;;  %s1800_s21 = smov 0   ;;  %s1802_s22 = smov 0  }
   0x8   :  { %s1804_s23 = smov 0   ;;  %s1806_s24 = smov 0  }
   0x9   :  { %s1808_s25 = smov 0   ;;  %s1810_s26 = smov 0  }
   0xa LB: > { %s2215_s27 = sadd.s32 4294967295, %s1747_s26   ;;  %p1226_p0 = scmp.ge.s32.totalorder %s1747_s26, 1  ;;  %s1747_s26 = sphi %s1810_s26, %s24_s26   ;;  %s1743_s25 = sphi %s1808_s25, %s2242_s25   ;;  %s1739_s24 = sphi %s1806_s24, %s2241_s24   ;;  %s1735_s23 = sphi %s1804_s23, %s2240_s23   ;;  %s1731_s22 = sphi %s1802_s22, %s2239_s22   ;;  %s1727_s21 = sphi %s1800_s21, %s2238_s21  }
   0xb   : > { %p1834_p1 = scmp.eq.s32.totalorder %s2215_s27, 0  ;;  %p200_p2 = scmp.lt.s32.totalorder %s1747_s26, 3 }
   0xc   : > { %s1749_s30 = smov [#allocation7]   ;;  %s1750_s9 = smov [#allocation10]  }
   0xd   : > { %s2221_s28 = scalar_select %p1834_p1, 1, 0 }
   0xe   : > { %p1839_p3 = pnand %p1226_p0, %p200_p2  ;;  %s212_s7 = sshll.u32 %s1749_s30, 4  ;;  %s1843_s7 = int_to_ptr.vmem [resolvable:$true] %s212_s7 }
   0xf   : > { %s238_s10 = sshll.u32 %s1750_s9, 4  ;;  %s1751_s11 = smov [#allocation9]   ;;  %s1854_s10 = int_to_ptr.vmem [resolvable:$true] %s238_s10 }
  0x10   : > { %s2222_s29 = scalar_select %p1839_p3, 1, 0 }
  0x11   : > { %p1398_p4 = pneg %p1839_p3  ;;  %s1856_s12 = sshll.u32 %s1751_s11, 4  ;;  %s226_s12 = int_to_ptr.vmem [resolvable:$true] %s1856_s12 }
  0x12   : > { %s2224_s1 = sld [smem:[#allocation18_spill]] }
  0x13   : > { %p1850_p6 = pnand %p1398_p4, %p1834_p1 }
  0x15   : > { %p1866_p8 = pneg %p1850_p6 }
  0x18   : > { %s1515_s15 = scalar_lea.hbm %s2224_s1, 256 }
  0x19   : > { %p1516_p7 = scmp.ne.s32.totalorder %s2224_s1, %s1515_s15  ;;  %p1522_p11 = scmp.lt.u32.totalorder %s1515_s15, %s2224_s1 }
  0x1b   : > { %p1518_p9 = pnand %p1866_p8, %p1516_p7 }
  0x1d   : > { %p1519_p10 = pneg %p1518_p9 }
  0x1f   : > { %p1524_p12 = pnand %p1522_p11, %p1519_p10 }
  0x21   : > { %1527 = shalt.err (!%p1524_p12)
}
  0x22   : > { %s1528_s30 = scalar_lea.vmem %s1843_s7, 256  ;;  %p1536_p4 = scmp.lt.s32.totalorder %s1843_s7, %s1843_s7 }
  0x23   : > { %p1529_p13 = scmp.ne.s32.totalorder %s1843_s7, %s1528_s30  ;;  %p1537_p5 = scmp.lt.s32.totalorder %s1528_s30, %s1528_s30 }
  0x25   : > { %p1531_p0 = pnand %p1529_p13, %p1866_p8  ;;  %p1538_p7 = por %p1537_p5, %p1536_p4 }
  0x27   : > { %p1532_p2 = pneg %p1531_p0 }
  0x29   : > { %p1539_p9 = pnand %p1538_p7, %p1532_p2 }
  0x2b   : > { %1542 = shalt.err (!%p1539_p9)
}
  0x2c   : > { %s1752_s9 = smov 64   ;;  %s1753_s11 = smov 4  }
  0x2d   : > { %1401 = dma.hbm_to_vmem [thread:$0]  (!%p1850_p6), %s2224_s1, 256, %s1843_s7, [#allocation8], %s1752_s9, %s1752_s9, %s1753_s11  }
  0x2e   : > { %s1543_s17 = scalar_lea.hbm %s2211_s3, 256 }
  0x2f   : > { %p1544_p5 = scmp.ne.s32.totalorder %s2211_s3, %s1543_s17  ;;  %p1550_p12 = scmp.lt.u32.totalorder %s1543_s17, %s2211_s3 }
  0x31   : > { %p1546_p10 = pnand %p1544_p5, %p1866_p8 }
  0x33   : > { %p1547_p11 = pneg %p1546_p10 }
  0x35   : > { %p1552_p13 = pnand %p1550_p12, %p1547_p11 }
  0x37   : > { %1555 = shalt.err (!%p1552_p13)
}
  0x38   : > { %s1556_s7 = scalar_lea.vmem %s1854_s10, 256  ;;  %p1564_p7 = scmp.lt.s32.totalorder %s1854_s10, %s1854_s10 }
  0x39   : > { %p1557_p0 = scmp.ne.s32.totalorder %s1854_s10, %s1556_s7  ;;  %p1565_p9 = scmp.lt.s32.totalorder %s1556_s7, %s1556_s7 }
  0x3b   : > { %p1559_p2 = pnand %p1557_p0, %p1866_p8  ;;  %p1566_p5 = por %p1565_p9, %p1564_p7 }
  0x3d   : > { %p1560_p4 = pneg %p1559_p2 }
  0x3f   : > { %p1567_p10 = pnand %p1566_p5, %p1560_p4 }
  0x41   : > { %1570 = shalt.err (!%p1567_p10)
}
  0x42   : > { %1407 = dma.hbm_to_vmem [thread:$0]  (!%p1850_p6), %s2211_s3, 256, %s1854_s10, [#allocation11], %s1752_s9, %s1752_s9, %s1753_s11  }
  0x43   : > { %s1571_s16 = scalar_lea.hbm %s2210_s2, 256 }
  0x44   : > { %p1572_p11 = scmp.ne.s32.totalorder %s2210_s2, %s1571_s16  ;;  %p1578_p0 = scmp.lt.u32.totalorder %s1571_s16, %s2210_s2 }
  0x46   : > { %p1574_p12 = pnand %p1572_p11, %p1866_p8 }
  0x48   : > { %p1575_p13 = pneg %p1574_p12 }
  0x4a   : > { %p1580_p2 = pnand %p1578_p0, %p1575_p13 }
  0x4c   : > { %1583 = shalt.err (!%p1580_p2)
}
  0x4d   : > { %s1584_s7 = scalar_lea.vmem %s226_s12, 256  ;;  %p1592_p5 = scmp.lt.s32.totalorder %s226_s12, %s226_s12 }
  0x4e   : > { %p1585_p4 = scmp.ne.s32.totalorder %s226_s12, %s1584_s7  ;;  %p1593_p10 = scmp.lt.s32.totalorder %s1584_s7, %s1584_s7 }
  0x50   : > { %p1587_p7 = pnand %p1585_p4, %p1866_p8  ;;  %p1594_p3 = por %p1593_p10, %p1592_p5 }
  0x52   : > { %p1588_p9 = pneg %p1587_p7 }
  0x54   : > { %p1595_p1 = pnand %p1594_p3, %p1588_p9 }
  0x56   : > { %1598 = shalt.err (!%p1595_p1)
}
  0x57   : > { %1404 = dma.hbm_to_vmem [thread:$0]  (!%p1850_p6), %s2210_s2, 256, %s226_s12, [#allocation8], %s1752_s9, %s1752_s9, %s1753_s11  }
  0x58   : > { %s1754_s13 = smov [#allocation12]   ;;  %s1599_s17 = scalar_lea.hbm %s2212_s4, 256 }
  0x59   : > { %s251_s14 = sshll.u32 %s1754_s13, 4  ;;  %p1600_p1 = scmp.ne.s32.totalorder %s2212_s4, %s1599_s17  ;;  %s252_s14 = int_to_ptr.vmem [resolvable:$true] %s251_s14 }
  0x5a   : > { %p1606_p12 = scmp.lt.u32.totalorder %s1599_s17, %s2212_s4 }
  0x5b   : > { %p1602_p3 = pnand %p1600_p1, %p1866_p8 }
  0x5d   : > { %p1603_p11 = pneg %p1602_p3 }
  0x5f   : > { %p1608_p13 = pnand %p1606_p12, %p1603_p11 }
  0x61   : > { %1611 = shalt.err (!%p1608_p13)
}
  0x62   : > { %s1612_s12 = scalar_lea.vmem %s252_s14, 256  ;;  %p1620_p7 = scmp.lt.s32.totalorder %s252_s14, %s252_s14 }
  0x63   : > { %p1613_p0 = scmp.ne.s32.totalorder %s252_s14, %s1612_s12  ;;  %p1621_p9 = scmp.lt.s32.totalorder %s1612_s12, %s1612_s12 }
  0x65   : > { %p1615_p2 = pnand %p1613_p0, %p1866_p8  ;;  %p1622_p5 = por %p1621_p9, %p1620_p7 }
  0x67   : > { %p1616_p4 = pneg %p1615_p2 }
  0x69   : > { %p1623_p10 = pnand %p1622_p5, %p1616_p4 }
  0x6b   : > { %1626 = shalt.err (!%p1623_p10)
}
  0x6c   : > { %1410 = dma.hbm_to_vmem [thread:$0]  (!%p1850_p6), %s2212_s4, 256, %s252_s14, [#allocation11], %s1752_s9, %s1752_s9, %s1753_s11  }
  0x6d   : > { %s1225_s8 = sadd.s32 4294967294, %s1747_s26   ;;  %s36_s18 = sadd.s32 1, %s1743_s25 }
  0x6e   : > { %p38_p8 = scmp.ge.s32.totalorder %s36_s18, 2  ;;  %s43_s13 = sadd.s32 1, %s1735_s23 }
  0x6f   : > { %p50_p1 = scmp.ne.s32.totalorder %s1735_s23, %s1731_s22  ;;  %p51_p3 = scmp.eq.s32.totalorder %s1747_s26, 0 }
  0x70   : > { %s2244_s18 = smov (%p38_p8, %s36_s18), 0  ;;  %p56_p12 = scmp.ne.s32.totalorder %s1731_s22, %s1727_s21 }
  0x71   : > { %p1967_p11 = por %p51_p3, %p50_p1  ;;  %s40_s9 = ssub.s32 %s1743_s25, %s2244_s18 }
  0x72   : > { %s2227_s11 = sadd.s32 4294967295, %s1747_s26   ;;  %p41_p13 = scmp.eq.s32.totalorder %s40_s9, 0 }
  0x73   : > { %p187_p6 = scmp.eq.s32.totalorder %s2227_s11, 1  ;;  %p2228_p0 = scmp.ne.s32.totalorder %s2221_s28, 0 }
  0x74   : > { %p193_p7 = scmp.eq.s32.totalorder %s1225_s8, 1  ;;  %p1423_p5 = scmp.lt.s32.totalorder %s1747_s26, 2 }
  0x75   : > { %p1979_p2 = por %p2228_p0, %p56_p12  ;;  %p1983_p4 = por %p187_p6, %p50_p1 }
  0x76   : > { %s1988_s17 = scalar_select %p41_p13, %s1735_s23, %s43_s13  }
  0x77   : > { %s2230_s16 = scalar_select %p1983_p4, 1, 0 }
  0x78   : > { %p1990_p9 = por %p193_p7, %p56_p12  ;;  %s268_s20 = sand.u32 1, %s1735_s23  }
  0x79   : > { %s1233_s30 = sshll.u32 %s1743_s25, 6  ;;  %s1232_s7 = sshll.u32 %s268_s20, 2 }
  0x7a   : > { %s2231_s19 = scalar_select %p1990_p9, 1, 0 }
  0x7b   : > { %s2000_s27 = scalar_lea.hbm %s2208_s0, %s1233_s30  ;;  %s272_s8 = scalar_lea.vmem [#allocation4], %s1232_s7 }
  0x7c   : > { %s279_s13 = sshll.u32 %s272_s8, 4  ;;  %p2004_p10 = pnand %p1423_p5, %p1967_p11  ;;  %s2008_s13 = int_to_ptr.vmem [resolvable:$true] %s279_s13 }
  0x7d   : > { %s269_s11 = scalar_lea.sflag [#allocation5], %s268_s20  ;;  %s1627_s1 = scalar_lea.hbm %s2000_s27, 64 }
  0x7e   : > { %p1628_p8 = scmp.ne.s32.totalorder %s2000_s27, %s1627_s1  ;;  %p1629_p1 = pneg %p2004_p10 }
  0x7f   : > { %s1632_s15 = scalar_lea.hbm %s2208_s0, 128  ;;  %p1633_p11 = scmp.lt.u32.totalorder %s2000_s27, %s2208_s0 }
  0x80   : > { %p1630_p3 = pnand %p1629_p1, %p1628_p8  ;;  %p1634_p6 = scmp.lt.u32.totalorder %s1632_s15, %s1627_s1 }
  0x81   : > { %p1636_p0 = scmp.lt.u32.totalorder %s1627_s1, %s2000_s27 }
  0x82   : > { %p1631_p12 = pneg %p1630_p3  ;;  %p1635_p13 = por %p1634_p6, %p1633_p11 }
  0x84   : > { %p1637_p7 = por %p1636_p0, %p1635_p13 }
  0x86   : > { %p1638_p5 = pnand %p1637_p7, %p1631_p12 }
  0x88   : > { %1641 = shalt.err (!%p1638_p5)
}
  0x89   : > { %s1642_s20 = scalar_lea.vmem %s2008_s13, 64  ;;  %s1755_s8 = smov [#allocation4]  }
  0x8a   : > { %p1643_p8 = scmp.ne.s32.totalorder %s2008_s13, %s1642_s20  ;;  %s1647_s30 = sshll.u32 %s1755_s8, 4  ;;  %s1648_s30 = int_to_ptr.vmem [resolvable:$false] %s1647_s30 }
  0x8b   : > { %s1649_s7 = scalar_lea.vmem %s1648_s30, 128  ;;  %p1650_p4 = scmp.lt.s32.totalorder %s2008_s13, %s1648_s30 }
  0x8c   : > { %p1645_p3 = pnand %p1643_p8, %p1629_p1  ;;  %p1651_p11 = scmp.lt.s32.totalorder %s1649_s7, %s1642_s20 }
  0x8e   : > { %p1646_p9 = pneg %p1645_p3  ;;  %p1652_p6 = por %p1651_p11, %p1650_p4 }
  0x90   : > { %p1653_p13 = pnand %p1652_p6, %p1646_p9 }
  0x92   : > { %1656 = shalt.err (!%p1653_p13)
}
  0x93   : > { %1414 = dma.hbm_to_vmem [thread:$0]  (!%p2004_p10), %s2000_s27, 64, %s2008_s13, %s269_s11  }
  0x94   : > { %p2233_p12 = scmp.ne.s32.totalorder %s2222_s29, 0 }
  0x95   : > { %s2038_s1 = sand.u32 (!%p2233_p12), 1, %s1731_s22  }
  0x96   : > { %288 = sbr.rel (%p2233_p12) target bundleno = 1614 (0x64e), region = 44  ;;  %s1235_s15 = sshll.u32 (!%p2233_p12), %s2038_s1, 2 }
  0x97   : > { %s291_s12 = scalar_lea.sflag (!%p2233_p12), [#allocation5], %s2038_s1  ;;  %s2042_s10 = scalar_lea.vmem (!%p2233_p12), [#allocation4], %s1235_s15 }
  0x9d   : > { %1710 = dma.done.wait (%p1979_p2), %s291_s12, 64  }
  0x9e   : > { %1712 = vsyncadd (%p1979_p2), %s291_s12, 4294967232  ;;  %p2234_p4 = scmp.ne.s32.totalorder %s2221_s28, 0 }
  0xa0   : > { %1714 = dma.done.wait (%p2234_p4), [#allocation8], 512  }
  0xa1   : > { %1716 = vsyncadd (%p2234_p4), [#allocation8], 4294966784 }
  0xa2   : > { %1718 = dma.done.wait (%p2234_p4), [#allocation11], 512  }
  0xa3   : > { %1720 = vsyncadd (%p2234_p4), [#allocation11], 4294966784  ;;  %v1756_v0 = vmov 0.0   ;;  %vm1757_vm0 = vmmov 0   ;;  %v1491_v1 = vld [vmem:[#allocation9] sm:$0xff]   ;;  %v1492_v2 = vld [vmem:[#allocation9 + $0x8] sm:$0xff]  }
  0xa4   : > { %1298 = vmatprep.subr.bf16.mxu0 %v1756_v0  ;;  %1302 = vmatprep.mubr.msk.bf16.mxu0 %vm1757_vm0, %v1756_v0  ;;  %v344_v3 = vld [vmem:[%s2042_s10] sm:$0xf]  ;;  %v1493_v4 = vld [vmem:[#allocation7] sm:$0xff]   ;;  %vm361_vm1 = vcmask 261120   ;;  %v1494_v6 = vld [vmem:[#allocation7 + $0x8] sm:$0xff]   ;;  %vm463_vm2 = vcmask 60416  }
  0xa5   : > { %1306 = vmatprep.subr.bf16.mxu1 %v1756_v0  ;;  %1310 = vmatprep.mubr.msk.bf16.mxu1 %vm1757_vm0, %v1756_v0  ;;  %v1495_v5 = vld [vmem:[#allocation10] sm:$0xff]   ;;  %v507_v7 = vld [vmem:[%s2042_s10] sm:$0xf]  ;;  %v1496_v8 = vld [vmem:[#allocation10 + $0x8] sm:$0xff]   ;;  %s1758_s28 = smov 104   ;;  %s1759_s29 = smov 120  }
  0xa6   : > { %1299 = vmatpush3.bf16.msra.mxu0 %v1491_v1  ;;  %1307 = vmatpush3.bf16.msra.mxu1 %v1495_v5  ;;  %s1760_s14 = smov 112   ;;  %vm580_vm3 = vcmask 64512   ;;  %vm820_vm4 = vcmask 1043456   ;;  %s1761_s27 = smov 8   ;;  %vm1018_vm5 = vcmask 130048   ;;  %vm1021_vm6 = vcmask 195584  }
  0xa7   : > { %1300 = vmatprep.subr.bf16.mxu0 %v1756_v0  ;;  %1308 = vmatprep.subr.bf16.mxu1 %v1756_v0  ;;  %s1762_s13 = smov 24   ;;  %s1763_s9 = smov 16  }
  0xa8   : > { %s1240_s11 = sshll.u32 %s2038_s1, 3  ;;  %s1265_s30 = sshll.u32 %s1739_s24, 7 }
  0xa9   : > { %s338_s7 = scalar_lea.vmem [#allocation13], %s1240_s11  ;;  %s1091_s24 = scalar_lea.sflag [#allocation6], %s2038_s1 }
  0xaa   : > { %1301 = vmatpush3.bf16.msra.mxu0 %v1492_v2  ;;  %1309 = vmatpush3.bf16.msra.mxu1 %v1496_v8  ;;  %s1105_s15 = sshll.u32 %s338_s7, 4  ;;  %p2235_p9 = scmp.ne.s32.totalorder %s2230_s16, 0  ;;  %s2160_s15 = int_to_ptr.vmem [resolvable:$true] %s1105_s15 }
  0xab   : > { %1314 = vmatprep.subr.bf16.mxu0 %v1756_v0  ;;  %1322 = vmatprep.subr.bf16.mxu1 %v1756_v0 }
  0xad   : > { %1303 = vmatmul.mubr.msk.bf16.vlgmr.msra.gmra.mrb[0].mxu0 %vm361_vm1, %v344_v3  ;;  %1311 = vmatmul.mubr.msk.bf16.vlgmr.msra.gmra.mrb[0].mxu1 %vm361_vm1, %v344_v3 }
  0xae   : > { %1315 = vmatpush3.bf16.msra.mxu0 %v1493_v4  ;;  %1318 = vmatprep.mubr.msk.bf16.mxu0 %vm1757_vm0, %v1756_v0 }
  0xaf   : > { %1316 = vmatprep.subr.bf16.mxu0 %v1756_v0  ;;  %1324 = vmatprep.mubr.msk.bf16.mxu1 %vm1757_vm0, %v1756_v0 }
  0xb2   : > { %1317 = vmatpush3.bf16.msra.mxu0 %v1494_v6 }
  0xb3   : > { %1328 = vmatprep.subr.bf16.mxu0 %v1756_v0 }
  0xb5   : > { %1319 = vmatmul.mubr.msk.bf16.vlgmr.msra.gmra.mrb[4].mxu0 %vm361_vm1, %v507_v7 }
  0xb6   : > { %1330 = vmatprep.mubr.msk.bf16.mxu0 %vm1757_vm0, %v1756_v0 }
 0x180   : > { %v399_v9 = vpop.f32.mrb[0].mxu0  ;;  %v455_v21 = vpop.f32.mrb[0].mxu1 }
 0x181   : > { %v461_v10 = vpack.c.bf16 %v399_v9, %v399_v9  ;;  %v1304_v11 = vpop.f32.mrb[1].mxu0  ;;  %v2091_v22 = vpack.c.bf16 %v455_v21, %v455_v21  ;;  %v1312_v23 = vpop.f32.mrb[1].mxu1 }
 0x182   : > { %v402_v12 = vpop.f32.mrb[2].mxu0  ;;  %v458_v24 = vpop.f32.mrb[2].mxu1 }
 0x183   : > { %464 = vst.msk [vmem:[#allocation2] sm:$0xf] %vm463_vm2, %v461_v10  ;;  %492 = vrot.lane.b32.xlu1 %v461_v10, %s1758_s28  ;;  %469 = vrot.lane.b32.xlu0 %v461_v10, %s1759_s29  ;;  %v1305_v13 = vpop.f32.mrb[3].mxu0  ;;  %465 = vst.msk [vmem:[#allocation3] sm:$0xf] %vm463_vm2, %v2091_v22  ;;  %v1313_v25 = vpop.f32.mrb[3].mxu1 }
 0x187   : > { %482 = vrot.lane.b32.xlu0 %v461_v10, %s1760_s14 }
 0x188   : > { %v562_v14 = vpop.f32.mrb[4].mxu0 }
 0x189   : > { %v568_v15 = vpack.c.bf16 %v562_v14, %v562_v14  ;;  %v1320_v16 = vpop.f32.mrb[5].mxu0 }
 0x18a   : > { %v576_v17 = vld [vmem:[#allocation2] sm:$0xf]  ;;  %v565_v18 = vpop.f32.mrb[6].mxu0  ;;  %v813_v38 = vld [vmem:[#allocation3] sm:$0xf] }
 0x18b   : > { %v585_v19 = vsel %vm580_vm3, %v576_v17, 0  ;;  %570 = vrot.lane.b32.xlu1 %v568_v15, %s1759_s29  ;;  %v1321_v20 = vpop.f32.mrb[7].mxu0  ;;  %572 = vrot.lane.b32.xlu0 %v568_v15, %s1760_s14  ;;  %v822_v39 = vsel %vm820_vm4, %v813_v38, 0 }
 0x18c   : > { %1323 = vmatpush3.bf16.xpose.msra.mxu1 %v585_v19 }
 0x18d   : > { %1334 = vmatprep.subr.bf16.mxu1 %v1756_v0 }
 0x18f   : > { %574 = vrot.lane.b32.xlu1 %v568_v15, %s1758_s28 }
 0x193   : > { %1325 = vmatmul.mubr.msk.bf16.vlgmr.msra.gmra.mrb[4].mxu1 %vm580_vm3, %v568_v15 }
 0x194   : > { %1336 = vmatprep.mubr.msk.bf16.mxu1 %vm1757_vm0, %v1756_v0 }
 0x1f5   : > { %v493_v26 = vpop.permute.xlu1 %492  ;;  %v470_v27 = vpop.permute.xlu0 %469 }
 0x1f6   : > { %496 = vst.msk [vmem:[#allocation2 + $0xc] sm:$0xf] %vm463_vm2, %v493_v26  ;;  %473 = vst.msk [vmem:[#allocation2 + $0x4] sm:$0xf] %vm463_vm2, %v470_v27 }
 0x1f9   : > { %v483_v28 = vpop.permute.xlu0 %482 }
 0x1fa   : > { %486 = vst.msk [vmem:[#allocation2 + $0x8] sm:$0xf] %vm463_vm2, %v483_v28 }
 0x1fd   : > { %v577_v29 = vld [vmem:[#allocation2 + $0x4] sm:$0xf]  ;;  %v579_v33 = vld [vmem:[#allocation2 + $0xc] sm:$0xf]  ;;  %v571_v34 = vpop.permute.xlu1 %570  ;;  %v573_v36 = vpop.permute.xlu0 %572 }
 0x1fe   : > { %v631_v30 = vsel %vm580_vm3, %v577_v29, 0  ;;  %v723_v35 = vsel %vm580_vm3, %v579_v33, 0 }
 0x1ff   : > { %1329 = vmatpush3.bf16.xpose.msra.mxu0 %v631_v30 }
 0x200   : > { %1340 = vmatprep.subr.bf16.mxu0 %v1756_v0 }
 0x201   : > { %v578_v31 = vld [vmem:[#allocation2 + $0x8] sm:$0xf]  ;;  %v575_v37 = vpop.permute.xlu1 %574 }
 0x202   : > { %v677_v32 = vsel %vm580_vm3, %v578_v31, 0 }
 0x203   : > { %1335 = vmatpush3.bf16.xpose.msra.mxu1 %v677_v32 }
 0x204   : > { %1346 = vmatprep.subr.bf16.mxu1 %v1756_v0 }
 0x206   : > { %1331 = vmatmul.mubr.msk.bf16.vlgmr.msra.gmra.mrb[8].mxu0 %vm580_vm3, %v571_v34 }
 0x207   : > { %1341 = vmatpush3.bf16.xpose.msra.mxu0 %v723_v35  ;;  %1342 = vmatprep.mubr.msk.bf16.mxu0 %vm1757_vm0, %v1756_v0 }
 0x208   : > { %1352 = vmatprep.subr.bf16.mxu0 %v1756_v0 }
 0x20a   : > { %1337 = vmatmul.mubr.msk.bf16.vlgmr.msra.gmra.mrb[8].mxu1 %vm580_vm3, %v573_v36 }
 0x20b   : > { %1348 = vmatprep.mubr.msk.bf16.mxu1 %vm1757_vm0, %v1756_v0  ;;  %1347 = vmatpush3.bf16.msra.mxu1 %v822_v39 }
 0x20c   : > { %1358 = vmatprep.subr.bf16.mxu1 %v1756_v0 }
 0x20e   : > { %1343 = vmatmul.mubr.msk.bf16.vlgmr.msra.gmra.mrb[12].mxu0 %vm580_vm3, %v575_v37 }
 0x20f   : > { %1354 = vmatprep.mubr.msk.bf16.mxu0 %vm1757_vm0, %v1756_v0 }
 0x266   : > { %v621_v40 = vpop.f32.mrb[4].mxu1 }
 0x267   : > { %v1326_v41 = vpop.f32.mrb[5].mxu1  ;;  %v765_v42 = vsel %vm580_vm3, %v621_v40, -inf }
 0x268   : > { %766 = vmax.xlane.f32.xlu0 %v765_v42  ;;  %v624_v43 = vpop.f32.mrb[6].mxu1 }
 0x269   : > { %v1327_v44 = vpop.f32.mrb[7].mxu1 }
 0x2d9   : > { %v667_v45 = vpop.f32.mrb[8].mxu0 }
 0x2da   : > { %v1332_v46 = vpop.f32.mrb[9].mxu0  ;;  %v768_v47 = vsel %vm580_vm3, %v667_v45, -inf }
 0x2db   : > { %769 = vmax.xlane.f32.xlu1 %v768_v47  ;;  %v670_v48 = vpop.f32.mrb[10].mxu0  ;;  %v1497_v46 = vld [vmem:[#allocation12] sm:$0xff]   ;;  %v1498_v47 = vld [vmem:[#allocation12 + $0x8] sm:$0xff]  }
 0x2dc   : > { %v1333_v49 = vpop.f32.mrb[11].mxu0 }
 0x2dd   : > { %v713_v50 = vpop.f32.mrb[8].mxu1 }
 0x2de   : > { %v1338_v51 = vpop.f32.mrb[9].mxu1  ;;  %v771_v52 = vsel %vm580_vm3, %v713_v50, -inf }
 0x2df   : > { %772 = vmax.xlane.f32.xlu0 %v771_v52  ;;  %v716_v53 = vpop.f32.mrb[10].mxu1 }
 0x2e0   : > { %v1339_v54 = vpop.f32.mrb[11].mxu1 }
 0x2e1   : > { %v759_v55 = vpop.f32.mrb[12].mxu0 }
 0x2e2   : > { %v1344_v56 = vpop.f32.mrb[13].mxu0  ;;  %v774_v57 = vsel %vm580_vm3, %v759_v55, -inf }
 0x2e3   : > { %775 = vmax.xlane.f32.xlu0 %v774_v57  ;;  %v762_v58 = vpop.f32.mrb[14].mxu0 }
 0x2e4   : > { %v1345_v59 = vpop.f32.mrb[15].mxu0 }
 0x2ec   : > { %477 = vrot.lane.b32.xlu1 %v2091_v22, %s1759_s29  ;;  %s1657_s29 = scalar_lea.vmem %s2160_s15, 128 }
 0x2ed   : > { %p1658_p2 = scmp.ne.s32.totalorder %s2160_s15, %s1657_s29 }
 0x2ef   : > { %p1659_p10 = pnand %p1658_p2, %p2235_p9 }
 0x2f1   : > { %p1660_p1 = pneg %p1659_p10 }
 0x2f5   : > { %v767_v60 = vpop.xlane.xlu0 %766 }
 0x2f6   : > { %v777_v61 = vsub.f32 %v621_v40, %v767_v60 }
 0x2f8   : > { %v781_v62 = vmul.f32 1.442695, %v777_v61 }
 0x2fa   : > { %1499 = vpow2.f32 %v781_v62 }
 0x304   : > { %v1500_v63 = vpop.eup %1499 }
 0x305   : > { %v789_v1 = vsel %vm580_vm3, %v1500_v63, 0.0 }
 0x310   : > { %790 = vadd.xlane.f32.xlu1 %v789_v1 }
 0x368   : > { %v770_v2 = vpop.xlane.xlu1 %769 }
 0x369   : > { %v778_v3 = vsub.f32 %v667_v45, %v770_v2 }
 0x36b   : > { %v783_v4 = vmul.f32 1.442695, %v778_v3 }
 0x36c   : > { %v773_v5 = vpop.xlane.xlu0 %772  ;;  %v478_v6 = vpop.permute.xlu1 %477 }
 0x36d   : > { %1501 = vpow2.f32 %v783_v4  ;;  %v779_v7 = vsub.f32 %v713_v50, %v773_v5  ;;  %481 = vst.msk [vmem:[#allocation3 + $0x4] sm:$0xf] %vm463_vm2, %v478_v6  ;;  %v1260_v6 = vld [vmem:[%s2213_s5] ss:$0 sm:$0xff] }
 0x36f   : > { %v785_v8 = vmul.f32 1.442695, %v779_v7 }
 0x370   : > { %v776_v9 = vpop.xlane.xlu0 %775 }
 0x371   : > { %1503 = vpow2.f32 %v785_v8  ;;  %v780_v10 = vsub.f32 %v759_v55, %v776_v9 }
 0x373   : > { %v787_v11 = vmul.f32 1.442695, %v780_v10 }
 0x374   : > { %v814_v12 = vld [vmem:[#allocation3 + $0x4] sm:$0xf] }
 0x375   : > { %1505 = vpow2.f32 %v787_v11  ;;  %v868_v13 = vsel %vm820_vm4, %v814_v12, 0 }
 0x376   : > { %1353 = vmatpush3.bf16.msra.mxu0 %v868_v13 }
 0x377   : > { %v1502_v14 = vpop.eup %1501  ;;  %1364 = vmatprep.subr.bf16.mxu0 %v1756_v0 }
 0x378   : > { %v792_v15 = vsel %vm580_vm3, %v1502_v14, 0.0 }
 0x379   : > { %793 = vadd.xlane.f32.xlu0 %v792_v15 }
 0x37b   : > { %v1504_v16 = vpop.eup %1503 }
 0x37c   : > { %v795_v17 = vsel %vm580_vm3, %v1504_v16, 0.0 }
 0x37d   : > { %796 = vadd.xlane.f32.xlu1 %v795_v17 }
 0x37f   : > { %v1506_v18 = vpop.eup %1505 }
 0x380   : > { %v798_v19 = vsel %vm580_vm3, %v1506_v18, 0.0 }
 0x381   : > { %799 = vadd.xlane.f32.xlu0 %v798_v19 }
 0x38e   : > { %497 = vrot.lane.b32.xlu1 %v2091_v22, %s1758_s28  ;;  %s2158_s28 = scalar_lea.hbm %s2214_s6, %s1265_s30 }
 0x397   : > { %487 = vrot.lane.b32.xlu0 %v2091_v22, %s1760_s14  ;;  %s1764_s14 = smov [#allocation13]  }
 0x39d   : > { %v791_v20 = vpop.xlane.xlu1 %790 }
 0x39e   : > { %1507 = vrcp.f32 %v791_v20 }
 0x3a8   : > { %v1508_v21 = vpop.eup %1507 }
 0x3a9   : > { %v805_v23 = vmul.f32 %v1508_v21, %v1500_v63 }
 0x3ab   : > { %v809_v24 = vpack.c.bf16 %v805_v23, %v805_v23 }
 0x3ad   : > { %1349 = vmatmul.mubr.msk.bf16.vlgmr.msra.gmra.mrb[12].mxu1 %vm580_vm3, %v809_v24 }
 0x3ae   : > { %1360 = vmatprep.mubr.msk.bf16.mxu1 %vm1757_vm0, %v1756_v0 }
 0x406   : > { %v794_v25 = vpop.xlane.xlu0 %793 }
 0x407   : > { %1509 = vrcp.f32 %v794_v25 }
 0x40a   : > { %v797_v26 = vpop.xlane.xlu1 %796 }
 0x40b   : > { %1511 = vrcp.f32 %v797_v26 }
 0x40e   : > { %v498_v27 = vpop.permute.xlu1 %497  ;;  %v800_v28 = vpop.xlane.xlu0 %799 }
 0x40f   : > { %501 = vst.msk [vmem:[#allocation3 + $0xc] sm:$0xf] %vm463_vm2, %v498_v27  ;;  %1513 = vrcp.f32 %v800_v28 }
 0x411   : > { %v1510_v22 = vpop.eup %1509 }
 0x412   : > { %v806_v29 = vmul.f32 %v1510_v22, %v1502_v14  ;;  %v488_v30 = vpop.permute.xlu0 %487 }
 0x413   : > { %491 = vst.msk [vmem:[#allocation3 + $0x8] sm:$0xf] %vm463_vm2, %v488_v30 }
 0x414   : > { %v810_v31 = vpack.c.bf16 %v806_v29, %v806_v29 }
 0x415   : > { %v1512_v32 = vpop.eup %1511 }
 0x416   : > { %1355 = vmatmul.mubr.msk.bf16.vlgmr.msra.gmra.mrb[16].mxu0 %vm580_vm3, %v810_v31  ;;  %v816_v33 = vld [vmem:[#allocation3 + $0xc] sm:$0xf]  ;;  %v807_v36 = vmul.f32 %v1512_v32, %v1504_v16 }
 0x417   : > { %v960_v34 = vsel %vm820_vm4, %v816_v33, 0  ;;  %1366 = vmatprep.mubr.msk.bf16.mxu0 %vm1757_vm0, %v1756_v0 }
 0x418   : > { %1365 = vmatpush3.bf16.msra.mxu0 %v960_v34  ;;  %v811_v41 = vpack.c.bf16 %v807_v36, %v807_v36 }
 0x419   : > { %v1514_v35 = vpop.eup %1513 }
 0x41a   : > { %v808_v37 = vmul.f32 %v1514_v35, %v1506_v18  ;;  %v815_v38 = vld [vmem:[#allocation3 + $0x8] sm:$0xf] }
 0x41b   : > { %v914_v39 = vsel %vm820_vm4, %v815_v38, 0 }
 0x41c   : > { %1359 = vmatpush3.bf16.msra.mxu1 %v914_v39  ;;  %v812_v40 = vpack.c.bf16 %v808_v37, %v808_v37 }
 0x41d   : > { %1370 = vmatprep.subr.bf16.mxu1 %v1756_v0 }
 0x41e   : > { %1367 = vmatmul.mubr.msk.bf16.vlgmr.msra.gmra.mrb[20].mxu0 %vm580_vm3, %v812_v40 }
 0x41f   : > { %1361 = vmatmul.mubr.msk.bf16.vlgmr.msra.gmra.mrb[16].mxu1 %vm580_vm3, %v811_v41 }
 0x420   : > { %1374 = vmatprep.mubr.msk.bf16.mxu1 %vm1757_vm0, %v1756_v0  ;;  %1371 = vmatpush3.bf16.msra.mxu1 %v1497_v46 }
 0x421   : > { %1372 = vmatprep.subr.bf16.mxu1 %v1756_v0 }
 0x424   : > { %1373 = vmatpush3.bf16.msra.mxu1 %v1498_v47 }
 0x480   : > { %v858_v42 = vpop.f32.mrb[12].mxu1 }
 0x481   : > { %v1350_v43 = vpop.f32.mrb[13].mxu1  ;;  %v1002_v63 = vpack.c.bf16 %v858_v42, %v858_v42 }
 0x482   : > { %v861_v44 = vpop.f32.mrb[14].mxu1 }
 0x483   : > { %v1351_v45 = vpop.f32.mrb[15].mxu1 }
 0x4e9   : > { %v904_v48 = vpop.f32.mrb[16].mxu0 }
 0x4ea   : > { %v1003_v49 = vpack.c.bf16 %v904_v48, %v904_v48  ;;  %v1356_v50 = vpop.f32.mrb[17].mxu0 }
 0x4eb   : > { %v907_v51 = vpop.f32.mrb[18].mxu0 }
 0x4ec   : > { %1007 = vrot.lane.b32.xlu1 %v1003_v49, %s1761_s27  ;;  %v1357_v52 = vpop.f32.mrb[19].mxu0  ;;  %s1661_s27 = sshll.u32 %s1764_s14, 4  ;;  %s1662_s27 = int_to_ptr.vmem [resolvable:$false] %s1661_s27 }
 0x4ed   : > { %p1664_p0 = scmp.lt.s32.totalorder %s2160_s15, %s1662_s27 }
 0x4f1   : > { %v996_v53 = vpop.f32.mrb[20].mxu0 }
 0x4f2   : > { %v1005_v54 = vpack.c.bf16 %v996_v53, %v996_v53  ;;  %v950_v55 = vpop.f32.mrb[16].mxu1  ;;  %v1368_v56 = vpop.f32.mrb[21].mxu0 }
 0x4f3   : > { %v1004_v57 = vpack.c.bf16 %v950_v55, %v950_v55  ;;  %v1362_v58 = vpop.f32.mrb[17].mxu1  ;;  %v999_v59 = vpop.f32.mrb[22].mxu0 }
 0x4f4   : > { %v953_v60 = vpop.f32.mrb[18].mxu1  ;;  %1013 = vrot.lane.b32.xlu1 %v1005_v54, %s1762_s13  ;;  %v1369_v0 = vpop.f32.mrb[23].mxu0  ;;  %s1663_s13 = scalar_lea.vmem %s1662_s27, 256 }
 0x4f5   : > { %1010 = vrot.lane.b32.xlu0 %v1004_v57, %s1763_s9  ;;  %v1363_v61 = vpop.f32.mrb[19].mxu1  ;;  %p1665_p7 = scmp.lt.s32.totalorder %s1663_s13, %s1657_s29 }
 0x4f7   : > { %p1666_p5 = por %p1665_p7, %p1664_p0 }
 0x4f9   : > { %p1667_p8 = pnand %p1666_p5, %p1660_p1 }
 0x55e   : > { %v1008_v62 = vpop.permute.xlu1 %1007 }
 0x55f   : > { %v1017_v1 = vsel %vm580_vm3, %v1002_v63, %v1008_v62 }
 0x566   : > { %v1014_v3 = vpop.permute.xlu1 %1013 }
 0x567   : > { %v1011_v2 = vpop.permute.xlu0 %1010 }
 0x568   : > { %v1020_v4 = vsel %vm1018_vm5, %v1017_v1, %v1011_v2 }
 0x569   : > { %v1023_v5 = vsel %vm1021_vm6, %v1020_v4, %v1014_v3 }
 0x56a   : > { %1375 = vmatmul.mubr.msk.bf16.vlgmr.msra.gmra.mrb[20].mxu1 %vm361_vm1, %v1023_v5 }
 0x63d   : > { %v1083_v7 = vpop.f32.mrb[20].mxu1 }
 0x63e   : > { %v1084_v8 = vadd.f32 %v1260_v6, %v1083_v7  ;;  %v1376_v9 = vpop.f32.mrb[21].mxu1 }
 0x63f   : > { %v1086_v10 = vpop.f32.mrb[22].mxu1 }
 0x640   : > { %v1377_v11 = vpop.f32.mrb[23].mxu1  ;;  %1089 = vst.msk [vmem:[%s338_s7] sm:$0xff] %vm361_vm1, %v1084_v8 }
 0x641   : > { %1670 = shalt.err (!%p1667_p8)
}
 0x642   : > { %s1671_s1 = scalar_lea.hbm %s2158_s28, 128  ;;  %s1675_s20 = scalar_lea.hbm %s2214_s6, 256 }
 0x643   : > { %p1672_p3 = scmp.ne.s32.totalorder %s2158_s28, %s1671_s1  ;;  %p1676_p13 = scmp.lt.u32.totalorder %s2158_s28, %s2214_s6 }
 0x644   : > { %p1677_p12 = scmp.lt.u32.totalorder %s1675_s20, %s1671_s1  ;;  %p1679_p2 = scmp.lt.u32.totalorder %s1671_s1, %s2158_s28 }
 0x645   : > { %p1673_p11 = pnand %p1672_p3, %p2235_p9 }
 0x646   : > { %p1678_p4 = por %p1677_p12, %p1676_p13 }
 0x647   : > { %p1674_p6 = pneg %p1673_p11 }
 0x648   : > { %p1680_p10 = por %p1679_p2, %p1678_p4 }
 0x64a   : > { %p1681_p1 = pnand %p1680_p10, %p1674_p6 }
 0x64c   : > { %1684 = shalt.err (!%p1681_p1)
}
 0x64d   : > { %1396 = dma.vmem_to_hbm [thread:$0]  (%p2235_p9), %s2160_s15, 128, %s2158_s28, %s1091_s24  }
 0x64e PF: > { %s1117_s7 = sand.u32 1, %s1727_s21   ;;  %p2236_p0 = scmp.ne.s32.totalorder %s2231_s19, 0 }
 0x64f   : > { %p2237_p7 = scmp.ge.s32.totalorder %s1747_s26, 2  ;;  %s1118_s12 = scalar_lea.sflag [#allocation6], %s1117_s7 }
 0x651   : > { %p1416_p5 = pnand %p2237_p7, %p2236_p0 }
 0x653   : > { %1722 = dma.done.wait (!%p1416_p5), %s1118_s12, 128  }
 0x654   : > { %1724 = vsyncadd (!%p1416_p5), %s1118_s12, 4294967168  ;;  %s24_s26 = sadd.s32 1, %s1747_s26   ;;  %s2238_s21 = smov %s1731_s22 }
 0x655   : > { %p21_p8 = scmp.ge.s32.totalorder %s24_s26, 4   ;;  %s2239_s22 = smov %s1735_s23 }
 0x656   : > { %s2240_s23 = smov %s1988_s17  ;;  %s2241_s24 = smov %s1743_s25 }
 0x657   : > { %s2242_s25 = smov %s2244_s18  ;;  %23 = sbr.rel (!%p21_p8) target bundleno = 10 (0xa), region = 116 }
 0x65e   :  { %1123 = vsyncpa [#allocation5], 1 }
 0x65f   :  { %1125 = vsyncpa [#allocation5 + $0x1], 1 }
 0x660   :  { %1126 = vsyncpa [#allocation8], 1 }
 0x661   :  { %1127 = vsyncpa [#allocation11], 1 }
 0x662   :  { %1128 = vsyncpa [#allocation6], 1 }
 0x663   :  { %1130 = vsyncpa [#allocation6 + $0x1], 1 }

// kernel: tpu_custom_call.1
= control target key start
LH: loop header
LB: loop body
LE: loop exit
PB: predicated region body
PF: predicated region fallthrough
CT: control target
= control target key end

     0   :  { %s2208_s0 = inlined_call_operand.hbm [shape: bf16[2,8,32], index: 0, kind: input, shape index: {}]   ;;  %s2209_s1 = inlined_call_operand.hbm [shape: bf16[32,32], index: 1, kind: input, shape index: {}]   ;;  %s2210_s2 = inlined_call_operand.hbm [shape: bf16[32,32], index: 2, kind: input, shape index: {}]   ;;  %s2211_s3 = inlined_call_operand.hbm [shape: bf16[32,32], index: 3, kind: input, shape index: {}]   ;;  %s2212_s4 = inlined_call_operand.hbm [shape: bf16[32,32], index: 4, kind: input, shape index: {}]   ;;  %s2213_s5 = inlined_call_operand.vmem [shape: f32[1,32], index: 5, kind: input, shape index: {}]   ;;  %s2214_s6 = inlined_call_operand.hbm [shape: f32[2,8,32], index: 6, kind: output, shape index: {}]  }
   0x1   :  { %2220 = sst [smem:[#allocation18_spill]] %s2209_s1 }
   0x2   :  { %11 = vsyncpa [#allocation5], 0 }
   0x3   :  { %13 = vsyncpa [#allocation5 + $0x1], 0 }
   0x4   :  { %14 = vsyncpa [#allocation8], 0 }
   0x5   :  { %15 = vsyncpa [#allocation11], 0 }
   0x6   :  { %16 = vsyncpa [#allocation6], 0 }
   0x7   :  { %18 = vsyncpa [#allocation6 + $0x1], 0  ;;  %s1800_s21 = smov 0   ;;  %s1802_s22 = smov 0  }
   0x8   :  { %s1804_s23 = smov 0   ;;  %s1806_s24 = smov 0  }
   0x9   :  { %s1808_s25 = smov 0   ;;  %s1810_s26 = smov 0  }
   0xa LB: > { %s2215_s27 = sadd.s32 4294967295, %s1747_s26   ;;  %p1226_p0 = scmp.ge.s32.totalorder %s1747_s26, 1  ;;  %s1747_s26 = sphi %s1810_s26, %s24_s26   ;;  %s1743_s25 = sphi %s1808_s25, %s2242_s25   ;;  %s1739_s24 = sphi %s1806_s24, %s2241_s24   ;;  %s1735_s23 = sphi %s1804_s23, %s2240_s23   ;;  %s1731_s22 = sphi %s1802_s22, %s2239_s22   ;;  %s1727_s21 = sphi %s1800_s21, %s2238_s21  }
   0xb   : > { %p1834_p1 = scmp.eq.s32.totalorder %s2215_s27, 0  ;;  %p200_p2 = scmp.lt.s32.totalorder %s1747_s26, 3 }
   0xc   : > { %s1749_s30 = smov [#allocation7]   ;;  %s1750_s9 = smov [#allocation10]  }
   0xd   : > { %s2221_s28 = scalar_select %p1834_p1, 1, 0 }
   0xe   : > { %p1839_p3 = pnand %p1226_p0, %p200_p2  ;;  %s212_s7 = sshll.u32 %s1749_s30, 4  ;;  %s1843_s7 = int_to_ptr.vmem [resolvable:$true] %s212_s7 }
   0xf   : > { %s238_s10 = sshll.u32 %s1750_s9, 4  ;;  %s1751_s11 = smov [#allocation9]   ;;  %s1854_s10 = int_to_ptr.vmem [resolvable:$true] %s238_s10 }
  0x10   : > { %s2222_s29 = scalar_select %p1839_p3, 1, 0 }
  0x11   : > { %p1398_p4 = pneg %p1839_p3  ;;  %s1856_s12 = sshll.u32 %s1751_s11, 4  ;;  %s226_s12 = int_to_ptr.vmem [resolvable:$true] %s1856_s12 }
  0x12   : > { %s2224_s1 = sld [smem:[#allocation18_spill]] }
  0x13   : > { %p1850_p6 = pnand %p1398_p4, %p1834_p1 }
  0x15   : > { %p1866_p8 = pneg %p1850_p6 }
  0x18   : > { %s1515_s15 = scalar_lea.hbm %s2224_s1, 256 }
  0x19   : > { %p1516_p7 = scmp.ne.s32.totalorder %s2224_s1, %s1515_s15  ;;  %p1522_p11 = scmp.lt.u32.totalorder %s1515_s15, %s2224_s1 }
  0x1b   : > { %p1518_p9 = pnand %p1866_p8, %p1516_p7 }
  0x1d   : > { %p1519_p10 = pneg %p1518_p9 }
  0x1f   : > { %p1524_p12 = pnand %p1522_p11, %p1519_p10 }
  0x21   : > { %1527 = shalt.err (!%p1524_p12)
}
  0x22   : > { %s1528_s30 = scalar_lea.vmem %s1843_s7, 256  ;;  %p1536_p4 = scmp.lt.s32.totalorder %s1843_s7, %s1843_s7 }
  0x23   : > { %p1529_p13 = scmp.ne.s32.totalorder %s1843_s7, %s1528_s30  ;;  %p1537_p5 = scmp.lt.s32.totalorder %s1528_s30, %s1528_s30 }
  0x25   : > { %p1531_p0 = pnand %p1529_p13, %p1866_p8  ;;  %p1538_p7 = por %p1537_p5, %p1536_p4 }
  0x27   : > { %p1532_p2 = pneg %p1531_p0 }
  0x29   : > { %p1539_p9 = pnand %p1538_p7, %p1532_p2 }
  0x2b   : > { %1542 = shalt.err (!%p1539_p9)
}
  0x2c   : > { %s1752_s9 = smov 64   ;;  %s1753_s11 = smov 4  }
  0x2d   : > { %1401 = dma.hbm_to_vmem [thread:$0]  (!%p1850_p6), %s2224_s1, 256, %s1843_s7, [#allocation8], %s1752_s9, %s1752_s9, %s1753_s11  }
  0x2e   : > { %s1543_s17 = scalar_lea.hbm %s2211_s3, 256 }
  0x2f   : > { %p1544_p5 = scmp.ne.s32.totalorder %s2211_s3, %s1543_s17  ;;  %p1550_p12 = scmp.lt.u32.totalorder %s1543_s17, %s2211_s3 }
  0x31   : > { %p1546_p10 = pnand %p1544_p5, %p1866_p8 }
  0x33   : > { %p1547_p11 = pneg %p1546_p10 }
  0x35   : > { %p1552_p13 = pnand %p1550_p12, %p1547_p11 }
  0x37   : > { %1555 = shalt.err (!%p1552_p13)
}
  0x38   : > { %s1556_s7 = scalar_lea.vmem %s1854_s10, 256  ;;  %p1564_p7 = scmp.lt.s32.totalorder %s1854_s10, %s1854_s10 }
  0x39   : > { %p1557_p0 = scmp.ne.s32.totalorder %s1854_s10, %s1556_s7  ;;  %p1565_p9 = scmp.lt.s32.totalorder %s1556_s7, %s1556_s7 }
  0x3b   : > { %p1559_p2 = pnand %p1557_p0, %p1866_p8  ;;  %p1566_p5 = por %p1565_p9, %p1564_p7 }
  0x3d   : > { %p1560_p4 = pneg %p1559_p2 }
  0x3f   : > { %p1567_p10 = pnand %p1566_p5, %p1560_p4 }
  0x41   : > { %1570 = shalt.err (!%p1567_p10)
}
  0x42   : > { %1407 = dma.hbm_to_vmem [thread:$0]  (!%p1850_p6), %s2211_s3, 256, %s1854_s10, [#allocation11], %s1752_s9, %s1752_s9, %s1753_s11  }
  0x43   : > { %s1571_s16 = scalar_lea.hbm %s2210_s2, 256 }
  0x44   : > { %p1572_p11 = scmp.ne.s32.totalorder %s2210_s2, %s1571_s16  ;;  %p1578_p0 = scmp.lt.u32.totalorder %s1571_s16, %s2210_s2 }
  0x46   : > { %p1574_p12 = pnand %p1572_p11, %p1866_p8 }
  0x48   : > { %p1575_p13 = pneg %p1574_p12 }
  0x4a   : > { %p1580_p2 = pnand %p1578_p0, %p1575_p13 }
  0x4c   : > { %1583 = shalt.err (!%p1580_p2)
}
  0x4d   : > { %s1584_s7 = scalar_lea.vmem %s226_s12, 256  ;;  %p1592_p5 = scmp.lt.s32.totalorder %s226_s12, %s226_s12 }
  0x4e   : > { %p1585_p4 = scmp.ne.s32.totalorder %s226_s12, %s1584_s7  ;;  %p1593_p10 = scmp.lt.s32.totalorder %s1584_s7, %s1584_s7 }
  0x50   : > { %p1587_p7 = pnand %p1585_p4, %p1866_p8  ;;  %p1594_p3 = por %p1593_p10, %p1592_p5 }
  0x52   : > { %p1588_p9 = pneg %p1587_p7 }
  0x54   : > { %p1595_p1 = pnand %p1594_p3, %p1588_p9 }
  0x56   : > { %1598 = shalt.err (!%p1595_p1)
}
  0x57   : > { %1404 = dma.hbm_to_vmem [thread:$0]  (!%p1850_p6), %s2210_s2, 256, %s226_s12, [#allocation8], %s1752_s9, %s1752_s9, %s1753_s11  }
  0x58   : > { %s1754_s13 = smov [#allocation12]   ;;  %s1599_s17 = scalar_lea.hbm %s2212_s4, 256 }
  0x59   : > { %s251_s14 = sshll.u32 %s1754_s13, 4  ;;  %p1600_p1 = scmp.ne.s32.totalorder %s2212_s4, %s1599_s17  ;;  %s252_s14 = int_to_ptr.vmem [resolvable:$true] %s251_s14 }
  0x5a   : > { %p1606_p12 = scmp.lt.u32.totalorder %s1599_s17, %s2212_s4 }
  0x5b   : > { %p1602_p3 = pnand %p1600_p1, %p1866_p8 }
  0x5d   : > { %p1603_p11 = pneg %p1602_p3 }
  0x5f   : > { %p1608_p13 = pnand %p1606_p12, %p1603_p11 }
  0x61   : > { %1611 = shalt.err (!%p1608_p13)
}
  0x62   : > { %s1612_s12 = scalar_lea.vmem %s252_s14, 256  ;;  %p1620_p7 = scmp.lt.s32.totalorder %s252_s14, %s252_s14 }
  0x63   : > { %p1613_p0 = scmp.ne.s32.totalorder %s252_s14, %s1612_s12  ;;  %p1621_p9 = scmp.lt.s32.totalorder %s1612_s12, %s1612_s12 }
  0x65   : > { %p1615_p2 = pnand %p1613_p0, %p1866_p8  ;;  %p1622_p5 = por %p1621_p9, %p1620_p7 }
  0x67   : > { %p1616_p4 = pneg %p1615_p2 }
  0x69   : > { %p1623_p10 = pnand %p1622_p5, %p1616_p4 }
  0x6b   : > { %1626 = shalt.err (!%p1623_p10)
}
  0x6c   : > { %1410 = dma.hbm_to_vmem [thread:$0]  (!%p1850_p6), %s2212_s4, 256, %s252_s14, [#allocation11], %s1752_s9, %s1752_s9, %s1753_s11  }
  0x6d   : > { %s1225_s8 = sadd.s32 4294967294, %s1747_s26   ;;  %s36_s18 = sadd.s32 1, %s1743_s25 }
  0x6e   : > { %p38_p8 = scmp.ge.s32.totalorder %s36_s18, 2  ;;  %s43_s13 = sadd.s32 1, %s1735_s23 }
  0x6f   : > { %p50_p1 = scmp.ne.s32.totalorder %s1735_s23, %s1731_s22  ;;  %p51_p3 = scmp.eq.s32.totalorder %s1747_s26, 0 }
  0x70   : > { %s2244_s18 = smov (%p38_p8, %s36_s18), 0  ;;  %p56_p12 = scmp.ne.s32.totalorder %s1731_s22, %s1727_s21 }
  0x71   : > { %p1967_p11 = por %p51_p3, %p50_p1  ;;  %s40_s9 = ssub.s32 %s1743_s25, %s2244_s18 }
  0x72   : > { %s2227_s11 = sadd.s32 4294967295, %s1747_s26   ;;  %p41_p13 = scmp.eq.s32.totalorder %s40_s9, 0 }
  0x73   : > { %p187_p6 = scmp.eq.s32.totalorder %s2227_s11, 1  ;;  %p2228_p0 = scmp.ne.s32.totalorder %s2221_s28, 0 }
  0x74   : > { %p193_p7 = scmp.eq.s32.totalorder %s1225_s8, 1  ;;  %p1423_p5 = scmp.lt.s32.totalorder %s1747_s26, 2 }
  0x75   : > { %p1979_p2 = por %p2228_p0, %p56_p12  ;;  %p1983_p4 = por %p187_p6, %p50_p1 }
  0x76   : > { %s1988_s17 = scalar_select %p41_p13, %s1735_s23, %s43_s13  }
  0x77   : > { %s2230_s16 = scalar_select %p1983_p4, 1, 0 }
  0x78   : > { %p1990_p9 = por %p193_p7, %p56_p12  ;;  %s268_s20 = sand.u32 1, %s1735_s23  }
  0x79   : > { %s1233_s30 = sshll.u32 %s1743_s25, 6  ;;  %s1232_s7 = sshll.u32 %s268_s20, 2 }
  0x7a   : > { %s2231_s19 = scalar_select %p1990_p9, 1, 0 }
  0x7b   : > { %s2000_s27 = scalar_lea.hbm %s2208_s0, %s1233_s30  ;;  %s272_s8 = scalar_lea.vmem [#allocation4], %s1232_s7 }
  0x7c   : > { %s279_s13 = sshll.u32 %s272_s8, 4  ;;  %p2004_p10 = pnand %p1423_p5, %p1967_p11  ;;  %s2008_s13 = int_to_ptr.vmem [resolvable:$true] %s279_s13 }
  0x7d   : > { %s269_s11 = scalar_lea.sflag [#allocation5], %s268_s20  ;;  %s1627_s1 = scalar_lea.hbm %s2000_s27, 64 }
  0x7e   : > { %p1628_p8 = scmp.ne.s32.totalorder %s2000_s27, %s1627_s1  ;;  %p1629_p1 = pneg %p2004_p10 }
  0x7f   : > { %s1632_s15 = scalar_lea.hbm %s2208_s0, 128  ;;  %p1633_p11 = scmp.lt.u32.totalorder %s2000_s27, %s2208_s0 }
  0x80   : > { %p1630_p3 = pnand %p1629_p1, %p1628_p8  ;;  %p1634_p6 = scmp.lt.u32.totalorder %s1632_s15, %s1627_s1 }
  0x81   : > { %p1636_p0 = scmp.lt.u32.totalorder %s1627_s1, %s2000_s27 }
  0x82   : > { %p1631_p12 = pneg %p1630_p3  ;;  %p1635_p13 = por %p1634_p6, %p1633_p11 }
  0x84   : > { %p1637_p7 = por %p1636_p0, %p1635_p13 }
  0x86   : > { %p1638_p5 = pnand %p1637_p7, %p1631_p12 }
  0x88   : > { %1641 = shalt.err (!%p1638_p5)
}
  0x89   : > { %s1642_s20 = scalar_lea.vmem %s2008_s13, 64  ;;  %s1755_s8 = smov [#allocation4]  }
  0x8a   : > { %p1643_p8 = scmp.ne.s32.totalorder %s2008_s13, %s1642_s20  ;;  %s1647_s30 = sshll.u32 %s1755_s8, 4  ;;  %s1648_s30 = int_to_ptr.vmem [resolvable:$false] %s1647_s30 }
  0x8b   : > { %s1649_s7 = scalar_lea.vmem %s1648_s30, 128  ;;  %p1650_p4 = scmp.lt.s32.totalorder %s2008_s13, %s1648_s30 }
  0x8c   : > { %p1645_p3 = pnand %p1643_p8, %p1629_p1  ;;  %p1651_p11 = scmp.lt.s32.totalorder %s1649_s7, %s1642_s20 }
  0x8e   : > { %p1646_p9 = pneg %p1645_p3  ;;  %p1652_p6 = por %p1651_p11, %p1650_p4 }
  0x90   : > { %p1653_p13 = pnand %p1652_p6, %p1646_p9 }
  0x92   : > { %1656 = shalt.err (!%p1653_p13)
}
  0x93   : > { %1414 = dma.hbm_to_vmem [thread:$0]  (!%p2004_p10), %s2000_s27, 64, %s2008_s13, %s269_s11  }
  0x94   : > { %p2233_p12 = scmp.ne.s32.totalorder %s2222_s29, 0 }
  0x95   : > { %s2038_s1 = sand.u32 (!%p2233_p12), 1, %s1731_s22  }
  0x96   : > { %288 = sbr.rel (%p2233_p12) target bundleno = 1614 (0x64e), region = 44  ;;  %s1235_s15 = sshll.u32 (!%p2233_p12), %s2038_s1, 2 }
  0x97   : > { %s291_s12 = scalar_lea.sflag (!%p2233_p12), [#allocation5], %s2038_s1  ;;  %s2042_s10 = scalar_lea.vmem (!%p2233_p12), [#allocation4], %s1235_s15 }
  0x9d   : > { %1710 = dma.done.wait (%p1979_p2), %s291_s12, 64  }
  0x9e   : > { %1712 = vsyncadd (%p1979_p2), %s291_s12, 4294967232  ;;  %p2234_p4 = scmp.ne.s32.totalorder %s2221_s28, 0 }
  0xa0   : > { %1714 = dma.done.wait (%p2234_p4), [#allocation8], 512  }
  0xa1   : > { %1716 = vsyncadd (%p2234_p4), [#allocation8], 4294966784 }
  0xa2   : > { %1718 = dma.done.wait (%p2234_p4), [#allocation11], 512  }
  0xa3   : > { %1720 = vsyncadd (%p2234_p4), [#allocation11], 4294966784  ;;  %v1756_v0 = vmov 0.0   ;;  %vm1757_vm0 = vmmov 0   ;;  %v1491_v1 = vld [vmem:[#allocation9] sm:$0xff]   ;;  %v1492_v2 = vld [vmem:[#allocation9 + $0x8] sm:$0xff]  }
  0xa4   : > { %1298 = vmatprep.subr.bf16.mxu0 %v1756_v0  ;;  %1302 = vmatprep.mubr.msk.bf16.mxu0 %vm1757_vm0, %v1756_v0  ;;  %v344_v3 = vld [vmem:[%s2042_s10] sm:$0xf]  ;;  %v1493_v4 = vld [vmem:[#allocation7] sm:$0xff]   ;;  %vm361_vm1 = vcmask 261120   ;;  %v1494_v6 = vld [vmem:[#allocation7 + $0x8] sm:$0xff]   ;;  %vm463_vm2 = vcmask 60416  }
  0xa5   : > { %1306 = vmatprep.subr.bf16.mxu1 %v1756_v0  ;;  %1310 = vmatprep.mubr.msk.bf16.mxu1 %vm1757_vm0, %v1756_v0  ;;  %v1495_v5 = vld [vmem:[#allocation10] sm:$0xff]   ;;  %v507_v7 = vld [vmem:[%s2042_s10] sm:$0xf]  ;;  %v1496_v8 = vld [vmem:[#allocation10 + $0x8] sm:$0xff]   ;;  %s1758_s28 = smov 104   ;;  %s1759_s29 = smov 120  }
  0xa6   : > { %1299 = vmatpush3.bf16.msra.mxu0 %v1491_v1  ;;  %1307 = vmatpush3.bf16.msra.mxu1 %v1495_v5  ;;  %s1760_s14 = smov 112   ;;  %vm580_vm3 = vcmask 64512   ;;  %vm820_vm4 = vcmask 1043456   ;;  %s1761_s27 = smov 8   ;;  %vm1018_vm5 = vcmask 130048   ;;  %vm1021_vm6 = vcmask 195584  }
  0xa7   : > { %1300 = vmatprep.subr.bf16.mxu0 %v1756_v0  ;;  %1308 = vmatprep.subr.bf16.mxu1 %v1756_v0  ;;  %s1762_s13 = smov 24   ;;  %s1763_s9 = smov 16  }
  0xa8   : > { %s1240_s11 = sshll.u32 %s2038_s1, 3  ;;  %s1265_s30 = sshll.u32 %s1739_s24, 7 }
  0xa9   : > { %s338_s7 = scalar_lea.vmem [#allocation13], %s1240_s11  ;;  %s1091_s24 = scalar_lea.sflag [#allocation6], %s2038_s1 }
  0xaa   : > { %1301 = vmatpush3.bf16.msra.mxu0 %v1492_v2  ;;  %1309 = vmatpush3.bf16.msra.mxu1 %v1496_v8  ;;  %s1105_s15 = sshll.u32 %s338_s7, 4  ;;  %p2235_p9 = scmp.ne.s32.totalorder %s2230_s16, 0  ;;  %s2160_s15 = int_to_ptr.vmem [resolvable:$true] %s1105_s15 }
  0xab   : > { %1314 = vmatprep.subr.bf16.mxu0 %v1756_v0  ;;  %1322 = vmatprep.subr.bf16.mxu1 %v1756_v0 }
  0xad   : > { %1303 = vmatmul.mubr.msk.bf16.vlgmr.msra.gmra.mrb[0].mxu0 %vm361_vm1, %v344_v3  ;;  %1311 = vmatmul.mubr.msk.bf16.vlgmr.msra.gmra.mrb[0].mxu1 %vm361_vm1, %v344_v3 }
  0xae   : > { %1315 = vmatpush3.bf16.msra.mxu0 %v1493_v4  ;;  %1318 = vmatprep.mubr.msk.bf16.mxu0 %vm1757_vm0, %v1756_v0 }
  0xaf   : > { %1316 = vmatprep.subr.bf16.mxu0 %v1756_v0  ;;  %1324 = vmatprep.mubr.msk.bf16.mxu1 %vm1757_vm0, %v1756_v0 }
  0xb2   : > { %1317 = vmatpush3.bf16.msra.mxu0 %v1494_v6 }
  0xb3   : > { %1328 = vmatprep.subr.bf16.mxu0 %v1756_v0 }
  0xb5   : > { %1319 = vmatmul.mubr.msk.bf16.vlgmr.msra.gmra.mrb[4].mxu0 %vm361_vm1, %v507_v7 }
  0xb6   : > { %1330 = vmatprep.mubr.msk.bf16.mxu0 %vm1757_vm0, %v1756_v0 }
 0x180   : > { %v399_v9 = vpop.f32.mrb[0].mxu0  ;;  %v455_v21 = vpop.f32.mrb[0].mxu1 }
 0x181   : > { %v461_v10 = vpack.c.bf16 %v399_v9, %v399_v9  ;;  %v1304_v11 = vpop.f32.mrb[1].mxu0  ;;  %v2091_v22 = vpack.c.bf16 %v455_v21, %v455_v21  ;;  %v1312_v23 = vpop.f32.mrb[1].mxu1 }
 0x182   : > { %v402_v12 = vpop.f32.mrb[2].mxu0  ;;  %v458_v24 = vpop.f32.mrb[2].mxu1 }
 0x183   : > { %464 = vst.msk [vmem:[#allocation2] sm:$0xf] %vm463_vm2, %v461_v10  ;;  %492 = vrot.lane.b32.xlu1 %v461_v10, %s1758_s28  ;;  %469 = vrot.lane.b32.xlu0 %v461_v10, %s1759_s29  ;;  %v1305_v13 = vpop.f32.mrb[3].mxu0  ;;  %465 = vst.msk [vmem:[#allocation3] sm:$0xf] %vm463_vm2, %v2091_v22  ;;  %v1313_v25 = vpop.f32.mrb[3].mxu1 }
 0x187   : > { %482 = vrot.lane.b32.xlu0 %v461_v10, %s1760_s14 }
 0x188   : > { %v562_v14 = vpop.f32.mrb[4].mxu0 }
 0x189   : > { %v568_v15 = vpack.c.bf16 %v562_v14, %v562_v14  ;;  %v1320_v16 = vpop.f32.mrb[5].mxu0 }
 0x18a   : > { %v576_v17 = vld [vmem:[#allocation2] sm:$0xf]  ;;  %v565_v18 = vpop.f32.mrb[6].mxu0  ;;  %v813_v38 = vld [vmem:[#allocation3] sm:$0xf] }
 0x18b   : > { %v585_v19 = vsel %vm580_vm3, %v576_v17, 0  ;;  %570 = vrot.lane.b32.xlu1 %v568_v15, %s1759_s29  ;;  %v1321_v20 = vpop.f32.mrb[7].mxu0  ;;  %572 = vrot.lane.b32.xlu0 %v568_v15, %s1760_s14  ;;  %v822_v39 = vsel %vm820_vm4, %v813_v38, 0 }
 0x18c   : > { %1323 = vmatpush3.bf16.xpose.msra.mxu1 %v585_v19 }
 0x18d   : > { %1334 = vmatprep.subr.bf16.mxu1 %v1756_v0 }
 0x18f   : > { %574 = vrot.lane.b32.xlu1 %v568_v15, %s1758_s28 }
 0x193   : > { %1325 = vmatmul.mubr.msk.bf16.vlgmr.msra.gmra.mrb[4].mxu1 %vm580_vm3, %v568_v15 }
 0x194   : > { %1336 = vmatprep.mubr.msk.bf16.mxu1 %vm1757_vm0, %v1756_v0 }
 0x1f5   : > { %v493_v26 = vpop.permute.xlu1 %492  ;;  %v470_v27 = vpop.permute.xlu0 %469 }
 0x1f6   : > { %496 = vst.msk [vmem:[#allocation2 + $0xc] sm:$0xf] %vm463_vm2, %v493_v26  ;;  %473 = vst.msk [vmem:[#allocation2 + $0x4] sm:$0xf] %vm463_vm2, %v470_v27 }
 0x1f9   : > { %v483_v28 = vpop.permute.xlu0 %482 }
 0x1fa   : > { %486 = vst.msk [vmem:[#allocation2 + $0x8] sm:$0xf] %vm463_vm2, %v483_v28 }
 0x1fd   : > { %v577_v29 = vld [vmem:[#allocation2 + $0x4] sm:$0xf]  ;;  %v579_v33 = vld [vmem:[#allocation2 + $0xc] sm:$0xf]  ;;  %v571_v34 = vpop.permute.xlu1 %570  ;;  %v573_v36 = vpop.permute.xlu0 %572 }
 0x1fe   : > { %v631_v30 = vsel %vm580_vm3, %v577_v29, 0  ;;  %v723_v35 = vsel %vm580_vm3, %v579_v33, 0 }
 0x1ff   : > { %1329 = vmatpush3.bf16.xpose.msra.mxu0 %v631_v30 }
 0x200   : > { %1340 = vmatprep.subr.bf16.mxu0 %v1756_v0 }
 0x201   : > { %v578_v31 = vld [vmem:[#allocation2 + $0x8] sm:$0xf]  ;;  %v575_v37 = vpop.permute.xlu1 %574 }
 0x202   : > { %v677_v32 = vsel %vm580_vm3, %v578_v31, 0 }
 0x203   : > { %1335 = vmatpush3.bf16.xpose.msra.mxu1 %v677_v32 }
 0x204   : > { %1346 = vmatprep.subr.bf16.mxu1 %v1756_v0 }
 0x206   : > { %1331 = vmatmul.mubr.msk.bf16.vlgmr.msra.gmra.mrb[8].mxu0 %vm580_vm3, %v571_v34 }
 0x207   : > { %1341 = vmatpush3.bf16.xpose.msra.mxu0 %v723_v35  ;;  %1342 = vmatprep.mubr.msk.bf16.mxu0 %vm1757_vm0, %v1756_v0 }
 0x208   : > { %1352 = vmatprep.subr.bf16.mxu0 %v1756_v0 }
 0x20a   : > { %1337 = vmatmul.mubr.msk.bf16.vlgmr.msra.gmra.mrb[8].mxu1 %vm580_vm3, %v573_v36 }
 0x20b   : > { %1348 = vmatprep.mubr.msk.bf16.mxu1 %vm1757_vm0, %v1756_v0  ;;  %1347 = vmatpush3.bf16.msra.mxu1 %v822_v39 }
 0x20c   : > { %1358 = vmatprep.subr.bf16.mxu1 %v1756_v0 }
 0x20e   : > { %1343 = vmatmul.mubr.msk.bf16.vlgmr.msra.gmra.mrb[12].mxu0 %vm580_vm3, %v575_v37 }
 0x20f   : > { %1354 = vmatprep.mubr.msk.bf16.mxu0 %vm1757_vm0, %v1756_v0 }
 0x266   : > { %v621_v40 = vpop.f32.mrb[4].mxu1 }
 0x267   : > { %v1326_v41 = vpop.f32.mrb[5].mxu1  ;;  %v765_v42 = vsel %vm580_vm3, %v621_v40, -inf }
 0x268   : > { %766 = vmax.xlane.f32.xlu0 %v765_v42  ;;  %v624_v43 = vpop.f32.mrb[6].mxu1 }
 0x269   : > { %v1327_v44 = vpop.f32.mrb[7].mxu1 }
 0x2d9   : > { %v667_v45 = vpop.f32.mrb[8].mxu0 }
 0x2da   : > { %v1332_v46 = vpop.f32.mrb[9].mxu0  ;;  %v768_v47 = vsel %vm580_vm3, %v667_v45, -inf }
 0x2db   : > { %769 = vmax.xlane.f32.xlu1 %v768_v47  ;;  %v670_v48 = vpop.f32.mrb[10].mxu0  ;;  %v1497_v46 = vld [vmem:[#allocation12] sm:$0xff]   ;;  %v1498_v47 = vld [vmem:[#allocation12 + $0x8] sm:$0xff]  }
 0x2dc   : > { %v1333_v49 = vpop.f32.mrb[11].mxu0 }
 0x2dd   : > { %v713_v50 = vpop.f32.mrb[8].mxu1 }
 0x2de   : > { %v1338_v51 = vpop.f32.mrb[9].mxu1  ;;  %v771_v52 = vsel %vm580_vm3, %v713_v50, -inf }
 0x2df   : > { %772 = vmax.xlane.f32.xlu0 %v771_v52  ;;  %v716_v53 = vpop.f32.mrb[10].mxu1 }
 0x2e0   : > { %v1339_v54 = vpop.f32.mrb[11].mxu1 }
 0x2e1   : > { %v759_v55 = vpop.f32.mrb[12].mxu0 }
 0x2e2   : > { %v1344_v56 = vpop.f32.mrb[13].mxu0  ;;  %v774_v57 = vsel %vm580_vm3, %v759_v55, -inf }
 0x2e3   : > { %775 = vmax.xlane.f32.xlu0 %v774_v57  ;;  %v762_v58 = vpop.f32.mrb[14].mxu0 }
 0x2e4   : > { %v1345_v59 = vpop.f32.mrb[15].mxu0 }
 0x2ec   : > { %477 = vrot.lane.b32.xlu1 %v2091_v22, %s1759_s29  ;;  %s1657_s29 = scalar_lea.vmem %s2160_s15, 128 }
 0x2ed   : > { %p1658_p2 = scmp.ne.s32.totalorder %s2160_s15, %s1657_s29 }
 0x2ef   : > { %p1659_p10 = pnand %p1658_p2, %p2235_p9 }
 0x2f1   : > { %p1660_p1 = pneg %p1659_p10 }
 0x2f5   : > { %v767_v60 = vpop.xlane.xlu0 %766 }
 0x2f6   : > { %v777_v61 = vsub.f32 %v621_v40, %v767_v60 }
 0x2f8   : > { %v781_v62 = vmul.f32 1.442695, %v777_v61 }
 0x2fa   : > { %1499 = vpow2.f32 %v781_v62 }
 0x304   : > { %v1500_v63 = vpop.eup %1499 }
 0x305   : > { %v789_v1 = vsel %vm580_vm3, %v1500_v63, 0.0 }
 0x310   : > { %790 = vadd.xlane.f32.xlu1 %v789_v1 }
 0x368   : > { %v770_v2 = vpop.xlane.xlu1 %769 }
 0x369   : > { %v778_v3 = vsub.f32 %v667_v45, %v770_v2 }
 0x36b   : > { %v783_v4 = vmul.f32 1.442695, %v778_v3 }
 0x36c   : > { %v773_v5 = vpop.xlane.xlu0 %772  ;;  %v478_v6 = vpop.permute.xlu1 %477 }
 0x36d   : > { %1501 = vpow2.f32 %v783_v4  ;;  %v779_v7 = vsub.f32 %v713_v50, %v773_v5  ;;  %481 = vst.msk [vmem:[#allocation3 + $0x4] sm:$0xf] %vm463_vm2, %v478_v6  ;;  %v1260_v6 = vld [vmem:[%s2213_s5] ss:$0 sm:$0xff] }
 0x36f   : > { %v785_v8 = vmul.f32 1.442695, %v779_v7 }
 0x370   : > { %v776_v9 = vpop.xlane.xlu0 %775 }
 0x371   : > { %1503 = vpow2.f32 %v785_v8  ;;  %v780_v10 = vsub.f32 %v759_v55, %v776_v9 }
 0x373   : > { %v787_v11 = vmul.f32 1.442695, %v780_v10 }
 0x374   : > { %v814_v12 = vld [vmem:[#allocation3 + $0x4] sm:$0xf] }
 0x375   : > { %1505 = vpow2.f32 %v787_v11  ;;  %v868_v13 = vsel %vm820_vm4, %v814_v12, 0 }
 0x376   : > { %1353 = vmatpush3.bf16.msra.mxu0 %v868_v13 }
 0x377   : > { %v1502_v14 = vpop.eup %1501  ;;  %1364 = vmatprep.subr.bf16.mxu0 %v1756_v0 }
 0x378   : > { %v792_v15 = vsel %vm580_vm3, %v1502_v14, 0.0 }
 0x379   : > { %793 = vadd.xlane.f32.xlu0 %v792_v15 }
 0x37b   : > { %v1504_v16 = vpop.eup %1503 }
 0x37c   : > { %v795_v17 = vsel %vm580_vm3, %v1504_v16, 0.0 }
 0x37d   : > { %796 = vadd.xlane.f32.xlu1 %v795_v17 }
 0x37f   : > { %v1506_v18 = vpop.eup %1505 }
 0x380   : > { %v798_v19 = vsel %vm580_vm3, %v1506_v18, 0.0 }
 0x381   : > { %799 = vadd.xlane.f32.xlu0 %v798_v19 }
 0x38e   : > { %497 = vrot.lane.b32.xlu1 %v2091_v22, %s1758_s28  ;;  %s2158_s28 = scalar_lea.hbm %s2214_s6, %s1265_s30 }
 0x397   : > { %487 = vrot.lane.b32.xlu0 %v2091_v22, %s1760_s14  ;;  %s1764_s14 = smov [#allocation13]  }
 0x39d   : > { %v791_v20 = vpop.xlane.xlu1 %790 }
 0x39e   : > { %1507 = vrcp.f32 %v791_v20 }
 0x3a8   : > { %v1508_v21 = vpop.eup %1507 }
 0x3a9   : > { %v805_v23 = vmul.f32 %v1508_v21, %v1500_v63 }
 0x3ab   : > { %v809_v24 = vpack.c.bf16 %v805_v23, %v805_v23 }
 0x3ad   : > { %1349 = vmatmul.mubr.msk.bf16.vlgmr.msra.gmra.mrb[12].mxu1 %vm580_vm3, %v809_v24 }
 0x3ae   : > { %1360 = vmatprep.mubr.msk.bf16.mxu1 %vm1757_vm0, %v1756_v0 }
 0x406   : > { %v794_v25 = vpop.xlane.xlu0 %793 }
 0x407   : > { %1509 = vrcp.f32 %v794_v25 }
 0x40a   : > { %v797_v26 = vpop.xlane.xlu1 %796 }
 0x40b   : > { %1511 = vrcp.f32 %v797_v26 }
 0x40e   : > { %v498_v27 = vpop.permute.xlu1 %497  ;;  %v800_v28 = vpop.xlane.xlu0 %799 }
 0x40f   : > { %501 = vst.msk [vmem:[#allocation3 + $0xc] sm:$0xf] %vm463_vm2, %v498_v27  ;;  %1513 = vrcp.f32 %v800_v28 }
 0x411   : > { %v1510_v22 = vpop.eup %1509 }
 0x412   : > { %v806_v29 = vmul.f32 %v1510_v22, %v1502_v14  ;;  %v488_v30 = vpop.permute.xlu0 %487 }
 0x413   : > { %491 = vst.msk [vmem:[#allocation3 + $0x8] sm:$0xf] %vm463_vm2, %v488_v30 }
 0x414   : > { %v810_v31 = vpack.c.bf16 %v806_v29, %v806_v29 }
 0x415   : > { %v1512_v32 = vpop.eup %1511 }
 0x416   : > { %1355 = vmatmul.mubr.msk.bf16.vlgmr.msra.gmra.mrb[16].mxu0 %vm580_vm3, %v810_v31  ;;  %v816_v33 = vld [vmem:[#allocation3 + $0xc] sm:$0xf]  ;;  %v807_v36 = vmul.f32 %v1512_v32, %v1504_v16 }
 0x417   : > { %v960_v34 = vsel %vm820_vm4, %v816_v33, 0  ;;  %1366 = vmatprep.mubr.msk.bf16.mxu0 %vm1757_vm0, %v1756_v0 }
 0x418   : > { %1365 = vmatpush3.bf16.msra.mxu0 %v960_v34  ;;  %v811_v41 = vpack.c.bf16 %v807_v36, %v807_v36 }
 0x419   : > { %v1514_v35 = vpop.eup %1513 }
 0x41a   : > { %v808_v37 = vmul.f32 %v1514_v35, %v1506_v18  ;;  %v815_v38 = vld [vmem:[#allocation3 + $0x8] sm:$0xf] }
 0x41b   : > { %v914_v39 = vsel %vm820_vm4, %v815_v38, 0 }
 0x41c   : > { %1359 = vmatpush3.bf16.msra.mxu1 %v914_v39  ;;  %v812_v40 = vpack.c.bf16 %v808_v37, %v808_v37 }
 0x41d   : > { %1370 = vmatprep.subr.bf16.mxu1 %v1756_v0 }
 0x41e   : > { %1367 = vmatmul.mubr.msk.bf16.vlgmr.msra.gmra.mrb[20].mxu0 %vm580_vm3, %v812_v40 }
 0x41f   : > { %1361 = vmatmul.mubr.msk.bf16.vlgmr.msra.gmra.mrb[16].mxu1 %vm580_vm3, %v811_v41 }
 0x420   : > { %1374 = vmatprep.mubr.msk.bf16.mxu1 %vm1757_vm0, %v1756_v0  ;;  %1371 = vmatpush3.bf16.msra.mxu1 %v1497_v46 }
 0x421   : > { %1372 = vmatprep.subr.bf16.mxu1 %v1756_v0 }
 0x424   : > { %1373 = vmatpush3.bf16.msra.mxu1 %v1498_v47 }
 0x480   : > { %v858_v42 = vpop.f32.mrb[12].mxu1 }
 0x481   : > { %v1350_v43 = vpop.f32.mrb[13].mxu1  ;;  %v1002_v63 = vpack.c.bf16 %v858_v42, %v858_v42 }
 0x482   : > { %v861_v44 = vpop.f32.mrb[14].mxu1 }
 0x483   : > { %v1351_v45 = vpop.f32.mrb[15].mxu1 }
 0x4e9   : > { %v904_v48 = vpop.f32.mrb[16].mxu0 }
 0x4ea   : > { %v1003_v49 = vpack.c.bf16 %v904_v48, %v904_v48  ;;  %v1356_v50 = vpop.f32.mrb[17].mxu0 }
 0x4eb   : > { %v907_v51 = vpop.f32.mrb[18].mxu0 }
 0x4ec   : > { %1007 = vrot.lane.b32.xlu1 %v1003_v49, %s1761_s27  ;;  %v1357_v52 = vpop.f32.mrb[19].mxu0  ;;  %s1661_s27 = sshll.u32 %s1764_s14, 4  ;;  %s1662_s27 = int_to_ptr.vmem [resolvable:$false] %s1661_s27 }
 0x4ed   : > { %p1664_p0 = scmp.lt.s32.totalorder %s2160_s15, %s1662_s27 }
 0x4f1   : > { %v996_v53 = vpop.f32.mrb[20].mxu0 }
 0x4f2   : > { %v1005_v54 = vpack.c.bf16 %v996_v53, %v996_v53  ;;  %v950_v55 = vpop.f32.mrb[16].mxu1  ;;  %v1368_v56 = vpop.f32.mrb[21].mxu0 }
 0x4f3   : > { %v1004_v57 = vpack.c.bf16 %v950_v55, %v950_v55  ;;  %v1362_v58 = vpop.f32.mrb[17].mxu1  ;;  %v999_v59 = vpop.f32.mrb[22].mxu0 }
 0x4f4   : > { %v953_v60 = vpop.f32.mrb[18].mxu1  ;;  %1013 = vrot.lane.b32.xlu1 %v1005_v54, %s1762_s13  ;;  %v1369_v0 = vpop.f32.mrb[23].mxu0  ;;  %s1663_s13 = scalar_lea.vmem %s1662_s27, 256 }
 0x4f5   : > { %1010 = vrot.lane.b32.xlu0 %v1004_v57, %s1763_s9  ;;  %v1363_v61 = vpop.f32.mrb[19].mxu1  ;;  %p1665_p7 = scmp.lt.s32.totalorder %s1663_s13, %s1657_s29 }
 0x4f7   : > { %p1666_p5 = por %p1665_p7, %p1664_p0 }
 0x4f9   : > { %p1667_p8 = pnand %p1666_p5, %p1660_p1 }
 0x55e   : > { %v1008_v62 = vpop.permute.xlu1 %1007 }
 0x55f   : > { %v1017_v1 = vsel %vm580_vm3, %v1002_v63, %v1008_v62 }
 0x566   : > { %v1014_v3 = vpop.permute.xlu1 %1013 }
 0x567   : > { %v1011_v2 = vpop.permute.xlu0 %1010 }
 0x568   : > { %v1020_v4 = vsel %vm1018_vm5, %v1017_v1, %v1011_v2 }
 0x569   : > { %v1023_v5 = vsel %vm1021_vm6, %v1020_v4, %v1014_v3 }
 0x56a   : > { %1375 = vmatmul.mubr.msk.bf16.vlgmr.msra.gmra.mrb[20].mxu1 %vm361_vm1, %v1023_v5 }
 0x63d   : > { %v1083_v7 = vpop.f32.mrb[20].mxu1 }
 0x63e   : > { %v1084_v8 = vadd.f32 %v1260_v6, %v1083_v7  ;;  %v1376_v9 = vpop.f32.mrb[21].mxu1 }
 0x63f   : > { %v1086_v10 = vpop.f32.mrb[22].mxu1 }
 0x640   : > { %v1377_v11 = vpop.f32.mrb[23].mxu1  ;;  %1089 = vst.msk [vmem:[%s338_s7] sm:$0xff] %vm361_vm1, %v1084_v8 }
 0x641   : > { %1670 = shalt.err (!%p1667_p8)
}
 0x642   : > { %s1671_s1 = scalar_lea.hbm %s2158_s28, 128  ;;  %s1675_s20 = scalar_lea.hbm %s2214_s6, 256 }
 0x643   : > { %p1672_p3 = scmp.ne.s32.totalorder %s2158_s28, %s1671_s1  ;;  %p1676_p13 = scmp.lt.u32.totalorder %s2158_s28, %s2214_s6 }
 0x644   : > { %p1677_p12 = scmp.lt.u32.totalorder %s1675_s20, %s1671_s1  ;;  %p1679_p2 = scmp.lt.u32.totalorder %s1671_s1, %s2158_s28 }
 0x645   : > { %p1673_p11 = pnand %p1672_p3, %p2235_p9 }
 0x646   : > { %p1678_p4 = por %p1677_p12, %p1676_p13 }
 0x647   : > { %p1674_p6 = pneg %p1673_p11 }
 0x648   : > { %p1680_p10 = por %p1679_p2, %p1678_p4 }
 0x64a   : > { %p1681_p1 = pnand %p1680_p10, %p1674_p6 }
 0x64c   : > { %1684 = shalt.err (!%p1681_p1)
}
 0x64d   : > { %1396 = dma.vmem_to_hbm [thread:$0]  (%p2235_p9), %s2160_s15, 128, %s2158_s28, %s1091_s24  }
 0x64e PF: > { %s1117_s7 = sand.u32 1, %s1727_s21   ;;  %p2236_p0 = scmp.ne.s32.totalorder %s2231_s19, 0 }
 0x64f   : > { %p2237_p7 = scmp.ge.s32.totalorder %s1747_s26, 2  ;;  %s1118_s12 = scalar_lea.sflag [#allocation6], %s1117_s7 }
 0x651   : > { %p1416_p5 = pnand %p2237_p7, %p2236_p0 }
 0x653   : > { %1722 = dma.done.wait (!%p1416_p5), %s1118_s12, 128  }
 0x654   : > { %1724 = vsyncadd (!%p1416_p5), %s1118_s12, 4294967168  ;;  %s24_s26 = sadd.s32 1, %s1747_s26   ;;  %s2238_s21 = smov %s1731_s22 }
 0x655   : > { %p21_p8 = scmp.ge.s32.totalorder %s24_s26, 4   ;;  %s2239_s22 = smov %s1735_s23 }
 0x656   : > { %s2240_s23 = smov %s1988_s17  ;;  %s2241_s24 = smov %s1743_s25 }
 0x657   : > { %s2242_s25 = smov %s2244_s18  ;;  %23 = sbr.rel (!%p21_p8) target bundleno = 10 (0xa), region = 116 }
 0x65e   :  { %1123 = vsyncpa [#allocation5], 1 }
 0x65f   :  { %1125 = vsyncpa [#allocation5 + $0x1], 1 }
 0x660   :  { %1126 = vsyncpa [#allocation8], 1 }
 0x661   :  { %1127 = vsyncpa [#allocation11], 1 }
 0x662   :  { %1128 = vsyncpa [#allocation6], 1 }
 0x663   :  { %1130 = vsyncpa [#allocation6 + $0x1], 1 }

</bundles_post_ra>
